<compile_context>
chip_gen: v6e
topology: v6e:2x2x1
jax: 0.10.0
libtpu: 0.0.40
codegen_flags: <defaults>
</compile_context>

<pallas_src>
import functools

import jax
import jax.numpy as jnp
from jax.experimental import pallas as pl
from jax.experimental.pallas import tpu as pltpu

BN_EPS = 1e-5


def projection_kernel(x_ref, w1_ref, gamma_ref, beta_ref, w2_ref, o_ref,
                      sum_ref, sumsq_ref, scale_ref, shift_ref,
                      *, n_rows, block_rows):
    """Fused Linear -> BatchNorm(train) -> ReLU -> Linear.

    grid = (2, num_row_tiles): axis 0 is the phase, axis 1 the row tile.
    """
    phase = pl.program_id(0)
    tile = pl.program_id(1)
    ragged = (n_rows % block_rows) != 0  # static Python bool

    # ---------------- phase 0: accumulate BN statistics ----------------
    @pl.when(phase == 0)
    def _accumulate_stats():
        @pl.when(tile == 0)
        def _init():
            sum_ref[...] = jnp.zeros_like(sum_ref)
            sumsq_ref[...] = jnp.zeros_like(sumsq_ref)

        h = jnp.dot(x_ref[...], w1_ref[...],
                    preferred_element_type=jnp.float32)      # (bm, n_hidden)
        if ragged:
            row = tile * block_rows + jax.lax.broadcasted_iota(
                jnp.int32, h.shape, 0)
            h = jnp.where(row < n_rows, h, 0.0)               # mask padded rows
        sum_ref[...] += jnp.sum(h, axis=0, keepdims=True)
        sumsq_ref[...] += jnp.sum(h * h, axis=0, keepdims=True)

    # ------------- phase 1: normalize, ReLU, second matmul -------------
    @pl.when(phase == 1)
    def _normalize_and_project():
        @pl.when(tile == 0)
        def _finalize_stats():
            inv_n = jnp.float32(1.0 / n_rows)
            mean = sum_ref[...] * inv_n
            var = jnp.maximum(sumsq_ref[...] * inv_n - mean * mean, 0.0)
            scale = gamma_ref[...] * jax.lax.rsqrt(var + BN_EPS)
            scale_ref[...] = scale
            shift_ref[...] = beta_ref[...] - mean * scale

        h = jnp.dot(x_ref[...], w1_ref[...],
                    preferred_element_type=jnp.float32)
        # Fused BN affine (2 VPU ops/elem) + ReLU.
        h = jnp.maximum(h * scale_ref[...] + shift_ref[...], 0.0)
        o_ref[...] = jnp.dot(h.astype(w2_ref.dtype), w2_ref[...],
                             preferred_element_type=jnp.float32
                             ).astype(o_ref.dtype)


def _pick_block_rows(n_rows):
    """Largest MXU-friendly row tile (<=512) that divides the batch.

    512 f32 rows at n_hidden=512 is ~1 MiB of VMEM, comfortably under the
    scoped limit on every generation (including v7x's 64 MiB/TC) while
    amortizing the ~0.35 us per-grid-step overhead.
    """
    if n_rows <= 512:
        return max(8, -(-n_rows // 8) * 8)  # single (sublane-padded) tile
    for bm in (512, 256, 128):
        if n_rows % bm == 0:
            return bm
    return 256  # ragged last tile; statistics are masked in the kernel


def projection_forward(x, w1_t, gamma, beta, w2_t, *, block_rows=None):
    """x: (N, n_input); w1_t: (n_input, n_hidden); w2_t: (n_hidden, n_out).

    Returns the (N, n_out) float32 output of Linear -> BN(train) -> ReLU -> Linear.
    """
    n_rows, n_input = x.shape
    n_hidden = w1_t.shape[1]
    n_out = w2_t.shape[1]
    assert w1_t.shape == (n_input, n_hidden)
    assert w2_t.shape == (n_hidden, n_out)

    bm = block_rows if block_rows is not None else _pick_block_rows(n_rows)
    num_tiles = pl.cdiv(n_rows, bm)

    gamma2 = gamma.reshape(1, n_hidden).astype(jnp.float32)
    beta2 = beta.reshape(1, n_hidden).astype(jnp.float32)

    kernel = functools.partial(projection_kernel, n_rows=n_rows, block_rows=bm)

    # Weights / BN params: index_map is constant -> block stays VMEM-resident.
    resident = lambda shape: pl.BlockSpec(shape, lambda p, i: (0, 0))

    return pl.pallas_call(
        kernel,
        out_shape=jax.ShapeDtypeStruct((n_rows, n_out), jnp.float32),
        grid_spec=pltpu.PrefetchScalarGridSpec(
            num_scalar_prefetch=0,
            grid=(2, num_tiles),
            in_specs=[
                pl.BlockSpec((bm, n_input), lambda p, i: (i, 0)),  # x row tile
                resident((n_input, n_hidden)),                     # w1 (resident)
                resident((1, n_hidden)),                           # gamma
                resident((1, n_hidden)),                           # beta
                resident((n_hidden, n_out)),                       # w2 (resident)
            ],
            # Phase 0 never writes the output; pinning its block index at 0
            # (i * p == 0) avoids spurious HBM writebacks of an untouched
            # buffer.  Phase 1 walks the tiles with a lane-dense (bm, n_out)
            # block (n_out is a multiple of 128 -> unmasked vst).
            out_specs=pl.BlockSpec((bm, n_out), lambda p, i: (i * p, 0)),
            scratch_shapes=[
                pltpu.VMEM((1, n_hidden), jnp.float32),  # sum(h)
                pltpu.VMEM((1, n_hidden), jnp.float32),  # sum(h*h)
                pltpu.VMEM((1, n_hidden), jnp.float32),  # fused BN scale
                pltpu.VMEM((1, n_hidden), jnp.float32),  # fused BN shift
            ],
        ),
        compiler_params=pltpu.CompilerParams(
            # Both axes carry sequential dependencies through VMEM scratch
            # (phase ordering, statistics accumulation) -> "arbitrary".
            # Note: v7x dual-TensorCore sharding of the row axis would need a
            # cross-core reduction of the BN sums between phases.
            dimension_semantics=("arbitrary", "arbitrary")),
    )(x, w1_t, gamma2, beta2, w2_t)


if __name__ == "__main__":
    # Small shapes consistent with the module defaults (n_hidden=512,
    # n_out=128) and a modest batch / input width.
    N = 256
    n_input = 32
    n_hidden = 512
    n_out = 128

    key = jax.random.PRNGKey(0)
    k_x, k_w1, k_w2 = jax.random.split(key, 3)

    x = jax.random.normal(k_x, (N, n_input), dtype=jnp.float32)

    # init_param(): weight ~ N(0, 1) * 0.02.  PyTorch stores Linear weights as
    # (out, in); the kernel takes transposed (in, out) copies.
    w1 = jax.random.normal(k_w1, (n_hidden, n_input), dtype=jnp.float32) * 0.02
    w2 = jax.random.normal(k_w2, (n_out, n_hidden), dtype=jnp.float32) * 0.02
    w1_t = jnp.asarray(w1.T)  # (n_input, n_hidden)
    w2_t = jnp.asarray(w2.T)  # (n_hidden, n_out)

    # BatchNorm1d default affine init: gamma = 1, beta = 0.
    gamma = jnp.ones((n_hidden,), dtype=jnp.float32)
    beta = jnp.zeros((n_hidden,), dtype=jnp.float32)

    # Pure-JAX reference (identical training-mode BatchNorm semantics).
    h_ref = x @ w1_t
    m = h_ref.mean(0, keepdims=True)
    v = ((h_ref - m) ** 2).mean(0, keepdims=True)
    h_ref = (h_ref - m) / jnp.sqrt(v + BN_EPS) * gamma + beta
    ref = jnp.maximum(h_ref, 0.0) @ w2_t

    # Tiled run: grid = (2 phases, 2 row tiles of 128).
    out = projection_forward(x, w1_t, gamma, beta, w2_t, block_rows=128)
    out = jax.block_until_ready(out)
    assert out.shape == (N, n_out)
    assert jnp.allclose(out, ref, atol=2e-4, rtol=2e-4), "mismatch (tiled)"

    # Auto tile-size path (single resident row tile here).
    out2 = projection_forward(x, w1_t, gamma, beta, w2_t)
    out2 = jax.block_until_ready(out2)
    assert jnp.allclose(out2, ref, atol=2e-4, rtol=2e-4), "mismatch (auto tile)"

    print("KERNEL_OK")
</pallas_src>

<mosaic_0001>
module attributes {stable_mosaic.version = 11 : i64} {
  func.func @projection_kernel(%arg0: i32, %arg1: i32, %arg2: memref<128x32xf32, #tpu.memory_space<vmem>>, %arg3: memref<32x512xf32, #tpu.memory_space<vmem>>, %arg4: memref<1x512xf32, #tpu.memory_space<vmem>>, %arg5: memref<1x512xf32, #tpu.memory_space<vmem>>, %arg6: memref<512x128xf32, #tpu.memory_space<vmem>>, %arg7: memref<128x128xf32, #tpu.memory_space<vmem>>, %arg8: memref<1x512xf32, #tpu.memory_space<vmem>>, %arg9: memref<1x512xf32, #tpu.memory_space<vmem>>, %arg10: memref<1x512xf32, #tpu.memory_space<vmem>>, %arg11: memref<1x512xf32, #tpu.memory_space<vmem>>) attributes {dimension_semantics = [#tpu.dimension_semantics<arbitrary>, #tpu.dimension_semantics<arbitrary>], iteration_bounds = array<i64: 2, 2>, scalar_prefetch = 0 : i64, scratch_operands = 4 : i64, tpu.core_type = #tpu.core_type<tc>, window_params = [{transform_indices = @transform_0, window_bounds = array<i64: 128, 32>}, {pipeline_mode = #tpu.pipeline_mode<synchronous>, transform_indices = @transform_1, window_bounds = array<i64: 32, 512>}, {pipeline_mode = #tpu.pipeline_mode<synchronous>, transform_indices = @transform_2, window_bounds = array<i64: 1, 512>}, {pipeline_mode = #tpu.pipeline_mode<synchronous>, transform_indices = @transform_3, window_bounds = array<i64: 1, 512>}, {pipeline_mode = #tpu.pipeline_mode<synchronous>, transform_indices = @transform_4, window_bounds = array<i64: 512, 128>}, {transform_indices = @transform_5, window_bounds = array<i64: 128, 128>}]} {
    %c0_i32 = arith.constant 0 : i32
    %0 = arith.cmpi eq, %arg0, %c0_i32 : i32
    %1 = arith.extui %0 : i1 to i32
    %c0_i32_0 = arith.constant 0 : i32
    %2 = arith.cmpi ne, %1, %c0_i32_0 : i32
    scf.if %2 {
      %c0_i32_2 = arith.constant 0 : i32
      %6 = arith.cmpi eq, %arg1, %c0_i32_2 : i32
      %7 = arith.extui %6 : i1 to i32
      %c0_i32_3 = arith.constant 0 : i32
      %8 = arith.cmpi ne, %7, %c0_i32_3 : i32
      scf.if %8 {
        %cst_17 = arith.constant 0.000000e+00 : f32
        %23 = vector.broadcast %cst_17 : f32 to vector<1x512xf32>
        %c0_18 = arith.constant 0 : index
        %c0_19 = arith.constant 0 : index
        %24 = vector.load %arg8[%c0_18, %c0_19] : memref<1x512xf32, #tpu.memory_space<vmem>>, vector<1x512xf32>
        tpu.vector_store %arg8[%c0_18, %c0_19], %23 {strides = array<i32>} : memref<1x512xf32, #tpu.memory_space<vmem>>, vector<1x512xf32>,
        %cst_20 = arith.constant 0.000000e+00 : f32
        %25 = vector.broadcast %cst_20 : f32 to vector<1x512xf32>
        %c0_21 = arith.constant 0 : index
        %c0_22 = arith.constant 0 : index
        %26 = vector.load %arg9[%c0_21, %c0_22] : memref<1x512xf32, #tpu.memory_space<vmem>>, vector<1x512xf32>
        tpu.vector_store %arg9[%c0_21, %c0_22], %25 {strides = array<i32>} : memref<1x512xf32, #tpu.memory_space<vmem>>, vector<1x512xf32>,
      } else {
      }
      %c0 = arith.constant 0 : index
      %c0_4 = arith.constant 0 : index
      %9 = vector.load %arg2[%c0, %c0_4] : memref<128x32xf32, #tpu.memory_space<vmem>>, vector<128x32xf32>
      %c0_5 = arith.constant 0 : index
      %c0_6 = arith.constant 0 : index
      %10 = vector.load %arg3[%c0_5, %c0_6] : memref<32x512xf32, #tpu.memory_space<vmem>>, vector<32x512xf32>
      %cst = arith.constant dense<0.000000e+00> : vector<128x512xf32>
      %11 = tpu.matmul %9, %10, %cst {dimension_numbers = #tpu.dot_dimension_numbers<[1], [0], [0], [1], [0, 0, 1, 1], [], []>} : vector<128x32xf32>, vector<32x512xf32>, vector<128x512xf32> -> vector<128x512xf32>
      %c0_7 = arith.constant 0 : index
      %c0_8 = arith.constant 0 : index
      %12 = vector.load %arg8[%c0_7, %c0_8] : memref<1x512xf32, #tpu.memory_space<vmem>>, vector<1x512xf32>
      %cst_9 = arith.constant dense<0.000000e+00> : vector<512xf32>
      %13 = vector.multi_reduction <add>, %11, %cst_9 [0] : vector<128x512xf32> to vector<512xf32>
      %14 = vector.shape_cast %13 : vector<512xf32> to vector<1x512xf32>
      %15 = arith.addf %12, %14 : vector<1x512xf32>
      %c0_10 = arith.constant 0 : index
      %c0_11 = arith.constant 0 : index
      %16 = vector.load %arg8[%c0_10, %c0_11] : memref<1x512xf32, #tpu.memory_space<vmem>>, vector<1x512xf32>
      tpu.vector_store %arg8[%c0_10, %c0_11], %15 {strides = array<i32>} : memref<1x512xf32, #tpu.memory_space<vmem>>, vector<1x512xf32>,
      %c0_12 = arith.constant 0 : index
      %c0_13 = arith.constant 0 : index
      %17 = vector.load %arg9[%c0_12, %c0_13] : memref<1x512xf32, #tpu.memory_space<vmem>>, vector<1x512xf32>
      %18 = arith.mulf %11, %11 : vector<128x512xf32>
      %cst_14 = arith.constant dense<0.000000e+00> : vector<512xf32>
      %19 = vector.multi_reduction <add>, %18, %cst_14 [0] : vector<128x512xf32> to vector<512xf32>
      %20 = vector.shape_cast %19 : vector<512xf32> to vector<1x512xf32>
      %21 = arith.addf %17, %20 : vector<1x512xf32>
      %c0_15 = arith.constant 0 : index
      %c0_16 = arith.constant 0 : index
      %22 = vector.load %arg9[%c0_15, %c0_16] : memref<1x512xf32, #tpu.memory_space<vmem>>, vector<1x512xf32>
      tpu.vector_store %arg9[%c0_15, %c0_16], %21 {strides = array<i32>} : memref<1x512xf32, #tpu.memory_space<vmem>>, vector<1x512xf32>,
    } else {
    }
    %c1_i32 = arith.constant 1 : i32
    %3 = arith.cmpi eq, %arg0, %c1_i32 : i32
    %4 = arith.extui %3 : i1 to i32
    %c0_i32_1 = arith.constant 0 : i32
    %5 = arith.cmpi ne, %4, %c0_i32_1 : i32
    scf.if %5 {
      %c0_i32_2 = arith.constant 0 : i32
      %6 = arith.cmpi eq, %arg1, %c0_i32_2 : i32
      %7 = arith.extui %6 : i1 to i32
      %c0_i32_3 = arith.constant 0 : i32
      %8 = arith.cmpi ne, %7, %c0_i32_3 : i32
      scf.if %8 {
        %c0_17 = arith.constant 0 : index
        %c0_18 = arith.constant 0 : index
        %23 = vector.load %arg8[%c0_17, %c0_18] : memref<1x512xf32, #tpu.memory_space<vmem>>, vector<1x512xf32>
        %cst_19 = arith.constant 3.906250e-03 : f32
        %24 = vector.broadcast %cst_19 : f32 to vector<1x512xf32>
        %25 = arith.mulf %23, %24 : vector<1x512xf32>
        %c0_20 = arith.constant 0 : index
        %c0_21 = arith.constant 0 : index
        %26 = vector.load %arg9[%c0_20, %c0_21] : memref<1x512xf32, #tpu.memory_space<vmem>>, vector<1x512xf32>
        %cst_22 = arith.constant 3.906250e-03 : f32
        %27 = vector.broadcast %cst_22 : f32 to vector<1x512xf32>
        %28 = arith.mulf %26, %27 : vector<1x512xf32>
        %29 = arith.mulf %25, %25 : vector<1x512xf32>
        %30 = arith.subf %28, %29 : vector<1x512xf32>
        %cst_23 = arith.constant 0.000000e+00 : f32
        %31 = vector.broadcast %cst_23 : f32 to vector<1x512xf32>
        %32 = arith.maximumf %30, %31 : vector<1x512xf32>
        %c0_24 = arith.constant 0 : index
        %c0_25 = arith.constant 0 : index
        %33 = vector.load %arg4[%c0_24, %c0_25] : memref<1x512xf32, #tpu.memory_space<vmem>>, vector<1x512xf32>
        %cst_26 = arith.constant 9.99999974E-6 : f32
        %34 = vector.broadcast %cst_26 : f32 to vector<1x512xf32>
        %35 = arith.addf %32, %34 : vector<1x512xf32>
        %36 = math.rsqrt %35 : vector<1x512xf32>
        %37 = arith.mulf %33, %36 : vector<1x512xf32>
        %c0_27 = arith.constant 0 : index
        %c0_28 = arith.constant 0 : index
        %38 = vector.load %arg10[%c0_27, %c0_28] : memref<1x512xf32, #tpu.memory_space<vmem>>, vector<1x512xf32>
        tpu.vector_store %arg10[%c0_27, %c0_28], %37 {strides = array<i32>} : memref<1x512xf32, #tpu.memory_space<vmem>>, vector<1x512xf32>,
        %c0_29 = arith.constant 0 : index
        %c0_30 = arith.constant 0 : index
        %39 = vector.load %arg5[%c0_29, %c0_30] : memref<1x512xf32, #tpu.memory_space<vmem>>, vector<1x512xf32>
        %40 = arith.mulf %25, %37 : vector<1x512xf32>
        %41 = arith.subf %39, %40 : vector<1x512xf32>
        %c0_31 = arith.constant 0 : index
        %c0_32 = arith.constant 0 : index
        %42 = vector.load %arg11[%c0_31, %c0_32] : memref<1x512xf32, #tpu.memory_space<vmem>>, vector<1x512xf32>
        tpu.vector_store %arg11[%c0_31, %c0_32], %41 {strides = array<i32>} : memref<1x512xf32, #tpu.memory_space<vmem>>, vector<1x512xf32>,
      } else {
      }
      %c0 = arith.constant 0 : index
      %c0_4 = arith.constant 0 : index
      %9 = vector.load %arg2[%c0, %c0_4] : memref<128x32xf32, #tpu.memory_space<vmem>>, vector<128x32xf32>
      %c0_5 = arith.constant 0 : index
      %c0_6 = arith.constant 0 : index
      %10 = vector.load %arg3[%c0_5, %c0_6] : memref<32x512xf32, #tpu.memory_space<vmem>>, vector<32x512xf32>
      %cst = arith.constant dense<0.000000e+00> : vector<128x512xf32>
      %11 = tpu.matmul %9, %10, %cst {dimension_numbers = #tpu.dot_dimension_numbers<[1], [0], [0], [1], [0, 0, 1, 1], [], []>} : vector<128x32xf32>, vector<32x512xf32>, vector<128x512xf32> -> vector<128x512xf32>
      %c0_7 = arith.constant 0 : index
      %c0_8 = arith.constant 0 : index
      %12 = vector.load %arg10[%c0_7, %c0_8] : memref<1x512xf32, #tpu.memory_space<vmem>>, vector<1x512xf32>
      %13 = vector.broadcast %12 : vector<1x512xf32> to vector<128x512xf32>
      %14 = arith.mulf %11, %13 : vector<128x512xf32>
      %c0_9 = arith.constant 0 : index
      %c0_10 = arith.constant 0 : index
      %15 = vector.load %arg11[%c0_9, %c0_10] : memref<1x512xf32, #tpu.memory_space<vmem>>, vector<1x512xf32>
      %16 = vector.broadcast %15 : vector<1x512xf32> to vector<128x512xf32>
      %17 = arith.addf %14, %16 : vector<128x512xf32>
      %cst_11 = arith.constant 0.000000e+00 : f32
      %18 = vector.broadcast %cst_11 : f32 to vector<128x512xf32>
      %19 = arith.maximumf %17, %18 : vector<128x512xf32>
      %c0_12 = arith.constant 0 : index
      %c0_13 = arith.constant 0 : index
      %20 = vector.load %arg6[%c0_12, %c0_13] : memref<512x128xf32, #tpu.memory_space<vmem>>, vector<512x128xf32>
      %cst_14 = arith.constant dense<0.000000e+00> : vector<128x128xf32>
      %21 = tpu.matmul %19, %20, %cst_14 {dimension_numbers = #tpu.dot_dimension_numbers<[1], [0], [0], [1], [0, 0, 1, 1], [], []>} : vector<128x512xf32>, vector<512x128xf32>, vector<128x128xf32> -> vector<128x128xf32>
      %c0_15 = arith.constant 0 : index
      %c0_16 = arith.constant 0 : index
      %22 = vector.load %arg7[%c0_15, %c0_16] : memref<128x128xf32, #tpu.memory_space<vmem>>, vector<128x128xf32>
      tpu.vector_store %arg7[%c0_15, %c0_16], %21 {strides = array<i32>} : memref<128x128xf32, #tpu.memory_space<vmem>>, vector<128x128xf32>,
    } else {
    }
    return
  }
  func.func @transform_0(%arg0: i32, %arg1: i32) -> (i32, i32) {
    %c0_i32 = arith.constant 0 : i32
    %c0_i32_0 = arith.constant 0 : i32
    return %arg1, %c0_i32 : i32, i32
  }
  func.func @transform_1(%arg0: i32, %arg1: i32) -> (i32, i32) {
    %c0_i32 = arith.constant 0 : i32
    %c0_i32_0 = arith.constant 0 : i32
    %c0_i32_1 = arith.constant 0 : i32
    return %c0_i32, %c0_i32_0 : i32, i32
  }
  func.func @transform_2(%arg0: i32, %arg1: i32) -> (i32, i32) {
    %c0_i32 = arith.constant 0 : i32
    %c0_i32_0 = arith.constant 0 : i32
    %c0_i32_1 = arith.constant 0 : i32
    return %c0_i32, %c0_i32_0 : i32, i32
  }
  func.func @transform_3(%arg0: i32, %arg1: i32) -> (i32, i32) {
    %c0_i32 = arith.constant 0 : i32
    %c0_i32_0 = arith.constant 0 : i32
    %c0_i32_1 = arith.constant 0 : i32
    return %c0_i32, %c0_i32_0 : i32, i32
  }
  func.func @transform_4(%arg0: i32, %arg1: i32) -> (i32, i32) {
    %c0_i32 = arith.constant 0 : i32
    %c0_i32_0 = arith.constant 0 : i32
    %c0_i32_1 = arith.constant 0 : i32
    return %c0_i32, %c0_i32_0 : i32, i32
  }
  func.func @transform_5(%arg0: i32, %arg1: i32) -> (i32, i32) {
    %0 = arith.muli %arg1, %arg0 : i32
    %c0_i32 = arith.constant 0 : i32
    %c0_i32_0 = arith.constant 0 : i32
    return %0, %c0_i32 : i32, i32
  }
}

</mosaic_0001>

<bundles_post_ra>
// kernel: tpu_custom_call.1
= control target key start
LH: loop header
LB: loop body
LE: loop exit
PB: predicated region body
PF: predicated region fallthrough
CT: control target
= control target key end

     0   :  { %10 = vsyncpa [#allocation7], 0  ;;  %s3222_s0 = inlined_call_operand.vmem [shape: f32[256,32], index: 0, kind: input, shape index: {}]   ;;  %s3223_s1 = inlined_call_operand.vmem [shape: f32[32,512], index: 1, kind: input, shape index: {}]   ;;  %s3224_s2 = inlined_call_operand.vmem [shape: f32[1,512], index: 2, kind: input, shape index: {}]   ;;  %s3225_s3 = inlined_call_operand.vmem [shape: f32[1,512], index: 3, kind: input, shape index: {}]   ;;  %s3226_s4 = inlined_call_operand.hbm [shape: f32[512,128], index: 4, kind: input, shape index: {}]   ;;  %s3227_s5 = inlined_call_operand.hbm [shape: f32[256,128], index: 5, kind: output, shape index: {}]  }
   0x1   :  { %11 = vsyncpa [#allocation8], 0 }
   0x2   :  { %13 = vsyncpa [#allocation8 + $0x1], 0  ;;  %s2610_s18 = smov 0   ;;  %s2612_s19 = smov 0  }
   0x3   :  { %s2614_s20 = smov 0   ;;  %s2616_s21 = smov 0  }
   0x4   :  { %s2618_s22 = smov 0   ;;  %s2620_s23 = smov 0  }
   0x5   :  { %s2622_s24 = smov 0   ;;  %s2624_s25 = smov 0  }
   0x6 LB: > { %s2110_s26 = sadd.s32 4294967295, %s2568_s25   ;;  %s2111_s27 = sadd.s32 4294967294, %s2568_s25   ;;  %s2568_s25 = sphi %s2624_s25, %s19_s25   ;;  %s2564_s24 = sphi %s2622_s24, %s3241_s24   ;;  %s2560_s23 = sphi %s2620_s23, %s3240_s23   ;;  %s2556_s22 = sphi %s2618_s22, %s3239_s22   ;;  %s2552_s21 = sphi %s2616_s21, %s3238_s21   ;;  %s2548_s20 = sphi %s2614_s20, %s3237_s20   ;;  %s2544_s19 = sphi %s2612_s19, %s3236_s19   ;;  %s2540_s18 = sphi %s2610_s18, %s3235_s18  }
   0x7   : > { %s28_s28 = sadd.s32 1, %s2560_s23  ;;  %s31_s29 = sadd.s32 1, %s2564_s24 }
   0x8   : > { %p29_p0 = scmp.ge.s32.totalorder %s28_s28, 2  ;;  %s145_s30 = smul.u32 %s2560_s23, %s2564_s24 }
   0x9   : > { %s150_s6 = sadd.s32 1, %s2548_s20  ;;  %p160_p1 = scmp.ne.s32.totalorder %s2548_s20, %s2544_s19 }
   0xa   : > { %s3243_s28 = smov (%p29_p0, %s28_s28), 0  ;;  %s3245_s29 = smov (!%p29_p0, %s31_s29), %s2564_s24 }
   0xb   : > { %p161_p2 = scmp.eq.s32.totalorder %s2110_s26, 3  ;;  %p166_p3 = scmp.ne.s32.totalorder %s2544_s19, %s2540_s18 }
   0xc   : > { %p33_p4 = scmp.ge.s32.totalorder %s3245_s29, 2  ;;  %p167_p5 = scmp.eq.s32.totalorder %s2111_s27, 3 }
   0xd   : > { %p2664_p6 = por %p161_p2, %p160_p1  ;;  %p2112_p7 = scmp.ge.s32.totalorder %s2568_s25, 1 }
   0xe   : > { %s3247_s29 = smov (%p33_p4, %s3245_s29), 0  ;;  %p2671_p8 = por %p167_p5, %p166_p3 }
   0xf   : > { %p174_p9 = scmp.lt.s32.totalorder %s2568_s25, 5  ;;  %s146_s9 = smul.u32 %s3247_s29, %s3243_s28 }
  0x10   : > { %s3230_s8 = scalar_select %p2671_p8, 1, 0 }
  0x11   : > { %p2678_p10 = pnand %p2112_p7, %p174_p9  ;;  %p2682_p11 = scmp.eq.s32.totalorder %s2110_s26, 0 }
  0x12   : > { %s147_s12 = ssub.s32 %s145_s30, %s146_s9  ;;  %s2570_s13 = smov [#allocation6]  }
  0x13   : > { %p148_p12 = scmp.eq.s32.totalorder %s147_s12, 0  ;;  %p2360_p13 = pneg %p2678_p10 }
  0x14   : > { %s195_s14 = sshll.u32 %s2570_s13, 4  ;;  %s196_s14 = int_to_ptr.vmem [resolvable:$true] %s195_s14 }
  0x15   : > { %s2689_s15 = scalar_select %p148_p12, %s2548_s20, %s150_s6  }
  0x16   : > { %p2361_p0 = pnand %p2682_p11, %p2360_p13  ;;  %s2457_s16 = scalar_lea.vmem %s196_s14, 8192 }
  0x17   : > { %p2458_p2 = scmp.ne.s32.totalorder %s196_s14, %s2457_s16  ;;  %p2465_p5 = scmp.lt.s32.totalorder %s196_s14, %s196_s14 }
  0x18   : > { %p2448_p1 = pneg %p2361_p0  ;;  %p2466_p7 = scmp.lt.s32.totalorder %s2457_s16, %s2457_s16 }
  0x1a   : > { %p2460_p3 = pnand %p2458_p2, %p2448_p1  ;;  %p2467_p9 = por %p2466_p7, %p2465_p5 }
  0x1c   : > { %p2461_p4 = pneg %p2460_p3 }
  0x1e   : > { %p2468_p8 = pnand %p2467_p9, %p2461_p4 }
  0x20   : > { %2471 = shalt.err (!%p2468_p8)
}
  0x21   : > { %s2571_s17 = smov 128   ;;  %s2572_s26 = smov 8  }
  0x22   : > { %2363 = dma.hbm_to_vmem [thread:$0]  (!%p2361_p0), %s3226_s4, 8192, %s196_s14, [#allocation7], %s2571_s17, %s2571_s17, %s2572_s26  }
  0x23   : > { %220 = sbr.rel (%p2678_p10) target bundleno = 895 (0x37f), region = 40 }
  0x28   : > { %2531 = dma.done.wait (%p2682_p11), [#allocation7], 8192  }
  0x29   : > { %2533 = vsyncadd (%p2682_p11), [#allocation7], 4294959104  ;;  %s3228_s6 = sand.u32 1, %s2544_s19   ;;  %s2118_s9 = sshll.u32 %s2552_s21, 4 }
  0x2a   : > { %s2117_s12 = sshll.u32 %s3228_s6, 7  ;;  %p249_p8 = scmp.lt.s32.totalorder %s2118_s9, 31 }
  0x2b   : > { %s2711_s17 = scalar_lea.vmem [#allocation9], %s2117_s12  ;;  %p2120_p10 = scmp.ne.s32.totalorder %s2556_s22, 0 }
  0x2c   : > { %s3249_s9 = smov (!%p249_p8, %s2118_s9), 31  ;;  %p2121_p11 = scmp.ne.s32.totalorder (!%p2120_p10), %s2552_s21, 0 }
  0x2d   : > { %s2119_s13 = sshll.u32 %s3249_s9, 3  ;;  %259 = sbr.rel (%p2120_p10) target bundleno = 352 (0x160), region = 48 }
  0x2e   : > { %s2709_s10 = scalar_lea.vmem %s3222_s0, %s2119_s13 }
  0x32   : > { %263 = sbr.rel (%p2121_p11) target bundleno = 59 (0x3b), region = 52 }
  0x37   : > { %v264_v0 = vlaneseq  ;;  %v2573_v1 = vmov 0.0  }
  0x39   : > { %vm266_vm0 = vcmp.lt.s32.totalorder %v264_v0, 512 }
  0x3a   : > { %268 = vst.msk [vmem:[#allocation2] sm:$0xf] %vm266_vm0, %v2573_v1  ;;  %269 = vst.msk [vmem:[#allocation3] sm:$0xf] %vm266_vm0, %v2573_v1 }
  0x3b PF: > { %v299_v2 = vld [vmem:[%s3223_s1 + $0x68] sm:$0xff]  ;;  %v301_v3 = vld [vmem:[%s3223_s1 + $0x78] sm:$0xff]  ;;  %v298_v4 = vld [vmem:[%s3223_s1 + $0x60] sm:$0xff]  ;;  %vm302_vm1 = vcmask 261120   ;;  %v2574_v19 = vmov 0.0   ;;  %v767_v53 = vlaneseq }
  0x3c   : > { %375 = vmatprep.subr.mxu0 %v299_v2  ;;  %536 = vmatprep.subr.mxu1 %v301_v3  ;;  %v300_v5 = vld [vmem:[%s3223_s1 + $0x70] sm:$0xff]  ;;  %v295_v6 = vld [vmem:[%s3223_s1 + $0x48] sm:$0xff]  ;;  %v297_v7 = vld [vmem:[%s3223_s1 + $0x58] sm:$0xff]  ;;  %v2575_v51 = vmov 1966171168  }
  0x3d   : > { %376 = vmatpush1.msra.mxu0 %v298_v4  ;;  %537 = vmatpush1.msra.mxu1 %v300_v5  ;;  %v294_v8 = vld [vmem:[%s3223_s1 + $0x40] sm:$0xff]  ;;  %v296_v9 = vld [vmem:[%s3223_s1 + $0x50] sm:$0xff]  ;;  %v291_v10 = vld [vmem:[%s3223_s1 + $0x28] sm:$0xff]  ;;  %v2843_v52 = vunpack.c.l.s4 %v2575_v51  ;;  %v2847_v63 = vshrl.u32 %v767_v53, 7  ;;  %vm790_vm2 = vcmp.lt.s32.totalorder %v767_v53, 512 }
  0x3e   : > { %377 = vmatprep.subr.mxu0 %v295_v6  ;;  %538 = vmatprep.subr.mxu1 %v297_v7  ;;  %v293_v11 = vld [vmem:[%s3223_s1 + $0x38] sm:$0xff]  ;;  %v290_v12 = vld [vmem:[%s3223_s1 + $0x20] sm:$0xff]  ;;  %v292_v13 = vld [vmem:[%s3223_s1 + $0x30] sm:$0xff] }
  0x3f   : > { %378 = vmatpush1.msra.mxu0 %v294_v8  ;;  %539 = vmatpush1.msra.mxu1 %v296_v9  ;;  %v287_v14 = vld [vmem:[%s3223_s1 + $0x8] sm:$0xff]  ;;  %v289_v15 = vld [vmem:[%s3223_s1 + $0x18] sm:$0xff]  ;;  %v286_v16 = vld [vmem:[%s3223_s1] sm:$0xff]  ;;  %v766_v62 = vunpack.c.0.s8 %v2843_v52 }
  0x40   : > { %379 = vmatprep.subr.mxu0 %v291_v10  ;;  %540 = vmatprep.subr.mxu1 %v293_v11  ;;  %v288_v17 = vld [vmem:[%s3223_s1 + $0x10] sm:$0xff]  ;;  %v270_v18 = vld [vmem:[%s2709_s10] sm:$0xff]  ;;  %v271_v20 = vld [vmem:[%s2709_s10 + $0x8] sm:$0xff] }
  0x41   : > { %380 = vmatpush1.msra.mxu0 %v290_v12  ;;  %541 = vmatpush1.msra.mxu1 %v292_v13  ;;  %v272_v21 = vld [vmem:[%s2709_s10 + $0x10] sm:$0xff]  ;;  %v273_v22 = vld [vmem:[%s2709_s10 + $0x18] sm:$0xff]  ;;  %v274_v23 = vld [vmem:[%s2709_s10 + $0x20] sm:$0xff] }
  0x42   : > { %381 = vmatprep.subr.mxu0 %v287_v14  ;;  %542 = vmatprep.subr.mxu1 %v289_v15  ;;  %v275_v24 = vld [vmem:[%s2709_s10 + $0x28] sm:$0xff]  ;;  %v276_v25 = vld [vmem:[%s2709_s10 + $0x30] sm:$0xff]  ;;  %v277_v26 = vld [vmem:[%s2709_s10 + $0x38] sm:$0xff] }
  0x43   : > { %382 = vmatpush1.msra.mxu0 %v286_v16  ;;  %415 = vmatprep.mubr.f32.mxu0 %v2574_v19  ;;  %v278_v27 = vld [vmem:[%s2709_s10 + $0x40] sm:$0xff]  ;;  %v279_v28 = vld [vmem:[%s2709_s10 + $0x48] sm:$0xff]  ;;  %v280_v29 = vld [vmem:[%s2709_s10 + $0x50] sm:$0xff] }
  0x44   : > { %543 = vmatpush1.msra.mxu1 %v288_v17  ;;  %576 = vmatprep.mubr.f32.mxu1 %v2574_v19  ;;  %v281_v30 = vld [vmem:[%s2709_s10 + $0x58] sm:$0xff]  ;;  %v282_v31 = vld [vmem:[%s2709_s10 + $0x60] sm:$0xff]  ;;  %v283_v32 = vld [vmem:[%s2709_s10 + $0x68] sm:$0xff] }
  0x45   : > { %2122 = vmatmul.mubr.msk.f32.vlgmr.msra.gmra.mxu0 %vm302_vm1, %v270_v18  ;;  %2138 = vmatmul.mubr.msk.f32.vlgmr.msra.gmra.mxu1 %vm302_vm1, %v270_v18  ;;  %v284_v33 = vld [vmem:[%s2709_s10 + $0x70] sm:$0xff]  ;;  %v285_v34 = vld [vmem:[%s2709_s10 + $0x78] sm:$0xff] }
  0x46   : > { %421 = vmatprep.mubr.f32.mxu0 %v2574_v19  ;;  %582 = vmatprep.mubr.f32.mxu1 %v2574_v19 }
  0x49   : > { %2123 = vmatmul.mubr.msk.f32.gmra.mxu0 %vm302_vm1, %v271_v20  ;;  %2139 = vmatmul.mubr.msk.f32.gmra.mxu1 %vm302_vm1, %v271_v20 }
  0x4a   : > { %427 = vmatprep.mubr.f32.mxu0 %v2574_v19  ;;  %588 = vmatprep.mubr.f32.mxu1 %v2574_v19 }
  0x4d   : > { %2124 = vmatmul.mubr.msk.f32.gmra.mxu0 %vm302_vm1, %v272_v21  ;;  %2140 = vmatmul.mubr.msk.f32.gmra.mxu1 %vm302_vm1, %v272_v21 }
  0x4e   : > { %433 = vmatprep.mubr.f32.mxu0 %v2574_v19  ;;  %594 = vmatprep.mubr.f32.mxu1 %v2574_v19 }
  0x51   : > { %2125 = vmatmul.mubr.msk.f32.gmra.mxu0 %vm302_vm1, %v273_v22  ;;  %2141 = vmatmul.mubr.msk.f32.gmra.mxu1 %vm302_vm1, %v273_v22 }
  0x52   : > { %439 = vmatprep.mubr.f32.mxu0 %v2574_v19  ;;  %600 = vmatprep.mubr.f32.mxu1 %v2574_v19 }
  0x55   : > { %2126 = vmatmul.mubr.msk.f32.gmra.mxu0 %vm302_vm1, %v274_v23  ;;  %2142 = vmatmul.mubr.msk.f32.gmra.mxu1 %vm302_vm1, %v274_v23 }
  0x56   : > { %445 = vmatprep.mubr.f32.mxu0 %v2574_v19  ;;  %606 = vmatprep.mubr.f32.mxu1 %v2574_v19 }
  0x59   : > { %2127 = vmatmul.mubr.msk.f32.gmra.mxu0 %vm302_vm1, %v275_v24  ;;  %2143 = vmatmul.mubr.msk.f32.gmra.mxu1 %vm302_vm1, %v275_v24 }
  0x5a   : > { %451 = vmatprep.mubr.f32.mxu0 %v2574_v19  ;;  %612 = vmatprep.mubr.f32.mxu1 %v2574_v19 }
  0x5d   : > { %2128 = vmatmul.mubr.msk.f32.gmra.mxu0 %vm302_vm1, %v276_v25  ;;  %2144 = vmatmul.mubr.msk.f32.gmra.mxu1 %vm302_vm1, %v276_v25 }
  0x5e   : > { %457 = vmatprep.mubr.f32.mxu0 %v2574_v19  ;;  %618 = vmatprep.mubr.f32.mxu1 %v2574_v19 }
  0x61   : > { %2129 = vmatmul.mubr.msk.f32.gmra.mxu0 %vm302_vm1, %v277_v26  ;;  %2145 = vmatmul.mubr.msk.f32.gmra.mxu1 %vm302_vm1, %v277_v26 }
  0x62   : > { %463 = vmatprep.mubr.f32.mxu0 %v2574_v19  ;;  %624 = vmatprep.mubr.f32.mxu1 %v2574_v19 }
  0x65   : > { %2130 = vmatmul.mubr.msk.f32.gmra.mxu0 %vm302_vm1, %v278_v27  ;;  %2146 = vmatmul.mubr.msk.f32.gmra.mxu1 %vm302_vm1, %v278_v27 }
  0x66   : > { %469 = vmatprep.mubr.f32.mxu0 %v2574_v19  ;;  %630 = vmatprep.mubr.f32.mxu1 %v2574_v19 }
  0x69   : > { %2131 = vmatmul.mubr.msk.f32.gmra.mxu0 %vm302_vm1, %v279_v28  ;;  %2147 = vmatmul.mubr.msk.f32.gmra.mxu1 %vm302_vm1, %v279_v28 }
  0x6a   : > { %475 = vmatprep.mubr.f32.mxu0 %v2574_v19  ;;  %636 = vmatprep.mubr.f32.mxu1 %v2574_v19 }
  0x6d   : > { %2132 = vmatmul.mubr.msk.f32.gmra.mxu0 %vm302_vm1, %v280_v29  ;;  %2148 = vmatmul.mubr.msk.f32.gmra.mxu1 %vm302_vm1, %v280_v29 }
  0x6e   : > { %481 = vmatprep.mubr.f32.mxu0 %v2574_v19  ;;  %642 = vmatprep.mubr.f32.mxu1 %v2574_v19 }
  0x71   : > { %2133 = vmatmul.mubr.msk.f32.gmra.mxu0 %vm302_vm1, %v281_v30  ;;  %2149 = vmatmul.mubr.msk.f32.gmra.mxu1 %vm302_vm1, %v281_v30 }
  0x72   : > { %487 = vmatprep.mubr.f32.mxu0 %v2574_v19  ;;  %648 = vmatprep.mubr.f32.mxu1 %v2574_v19 }
  0x75   : > { %2134 = vmatmul.mubr.msk.f32.gmra.mxu0 %vm302_vm1, %v282_v31  ;;  %2150 = vmatmul.mubr.msk.f32.gmra.mxu1 %vm302_vm1, %v282_v31 }
  0x76   : > { %493 = vmatprep.mubr.f32.mxu0 %v2574_v19  ;;  %654 = vmatprep.mubr.f32.mxu1 %v2574_v19 }
  0x79   : > { %2135 = vmatmul.mubr.msk.f32.gmra.mxu0 %vm302_vm1, %v283_v32  ;;  %2151 = vmatmul.mubr.msk.f32.gmra.mxu1 %vm302_vm1, %v283_v32 }
  0x7a   : > { %499 = vmatprep.mubr.f32.mxu0 %v2574_v19  ;;  %660 = vmatprep.mubr.f32.mxu1 %v2574_v19 }
  0x7d   : > { %2136 = vmatmul.mubr.msk.f32.gmra.mxu0 %vm302_vm1, %v284_v33  ;;  %2152 = vmatmul.mubr.msk.f32.gmra.mxu1 %vm302_vm1, %v284_v33 }
  0x7e   : > { %505 = vmatprep.mubr.f32.mxu0 %v2574_v19  ;;  %666 = vmatprep.mubr.f32.mxu1 %v2574_v19 }
  0x81   : > { %2137 = vmatmul.mubr.msk.f32.gmra.mxu0 %vm302_vm1, %v285_v34  ;;  %2153 = vmatmul.mubr.msk.f32.gmra.mxu1 %vm302_vm1, %v285_v34 }
 0x105   : > { %v417_v35 = vpop.f32.mrf.mxu0  ;;  %v578_v36 = vpop.f32.mrf.mxu1 }
 0x106   : > { %v794_v60 = vmul.f32 %v417_v35, %v417_v35  ;;  %v796_v0 = vmul.f32 %v578_v36, %v578_v36 }
 0x107   : > { %v419_v37 = vpop.f32.mrf.mxu0  ;;  %v580_v38 = vpop.f32.mrf.mxu1 }
 0x108   : > { %v795_v1 = vmul.f32 %v419_v37, %v419_v37  ;;  %v797_v6 = vmul.f32 %v580_v38, %v580_v38 }
 0x109   : > { %v423_v39 = vpop.f32.mrf.mxu0  ;;  %v584_v40 = vpop.f32.mrf.mxu1 }
 0x10a   : > { %v798_v56 = vmul.f32 %v423_v39, %v423_v39  ;;  %v800_v57 = vmul.f32 %v584_v40, %v584_v40  ;;  %v674_v7 = vadd.f32 %v423_v39, %v417_v35  ;;  %v716_v9 = vadd.f32 %v584_v40, %v578_v36 }
 0x10b   : > { %v425_v41 = vpop.f32.mrf.mxu0  ;;  %v586_v42 = vpop.f32.mrf.mxu1 }
 0x10c   : > { %v799_v61 = vmul.f32 %v425_v41, %v425_v41  ;;  %v801_v2 = vmul.f32 %v586_v42, %v586_v42  ;;  %v858_v8 = vadd.f32 %v798_v56, %v794_v60  ;;  %v900_v10 = vadd.f32 %v800_v57, %v796_v0 }
 0x10d   : > { %v429_v43 = vpop.f32.mrf.mxu0  ;;  %v590_v44 = vpop.f32.mrf.mxu1  ;;  %v695_v11 = vadd.f32 %v425_v41, %v419_v37  ;;  %v737_v17 = vadd.f32 %v586_v42, %v580_v38 }
 0x10e   : > { %v802_v3 = vmul.f32 %v429_v43, %v429_v43  ;;  %v804_v12 = vmul.f32 %v590_v44, %v590_v44  ;;  %v879_v16 = vadd.f32 %v799_v61, %v795_v1  ;;  %v921_v20 = vadd.f32 %v801_v2, %v797_v6 }
 0x10f   : > { %v431_v45 = vpop.f32.mrf.mxu0  ;;  %v592_v46 = vpop.f32.mrf.mxu1  ;;  %v675_v21 = vadd.f32 %v674_v7, %v429_v43  ;;  %v717_v23 = vadd.f32 %v716_v9, %v590_v44 }
 0x110   : > { %v803_v13 = vmul.f32 %v431_v45, %v431_v45  ;;  %v805_v18 = vmul.f32 %v592_v46, %v592_v46  ;;  %v859_v22 = vadd.f32 %v858_v8, %v802_v3  ;;  %v696_v26 = vadd.f32 %v695_v11, %v431_v45 }
 0x111   : > { %v435_v47 = vpop.f32.mrf.mxu0  ;;  %v596_v48 = vpop.f32.mrf.mxu1  ;;  %v738_v27 = vadd.f32 %v737_v17, %v592_v46  ;;  %v901_v30 = vadd.f32 %v900_v10, %v804_v12 }
 0x112   : > { %v806_v19 = vmul.f32 %v435_v47, %v435_v47  ;;  %v808_v28 = vmul.f32 %v596_v48, %v596_v48  ;;  %v880_v31 = vadd.f32 %v879_v16, %v803_v13  ;;  %v922_v36 = vadd.f32 %v921_v20, %v805_v18 }
 0x113   : > { %v437_v49 = vpop.f32.mrf.mxu0  ;;  %v598_v50 = vpop.f32.mrf.mxu1  ;;  %v676_v37 = vadd.f32 %v675_v21, %v435_v47  ;;  %v718_v39 = vadd.f32 %v717_v23, %v596_v48 }
 0x114   : > { %v807_v29 = vmul.f32 %v437_v49, %v437_v49  ;;  %v809_v32 = vmul.f32 %v598_v50, %v598_v50  ;;  %v860_v38 = vadd.f32 %v859_v22, %v806_v19  ;;  %v697_v40 = vadd.f32 %v696_v26, %v437_v49 }
 0x115   : > { %v441_v54 = vpop.f32.mrf.mxu0  ;;  %v602_v55 = vpop.f32.mrf.mxu1  ;;  %v739_v41 = vadd.f32 %v738_v27, %v598_v50  ;;  %v902_v45 = vadd.f32 %v901_v30, %v808_v28 }
 0x116   : > { %v810_v33 = vmul.f32 %v441_v54, %v441_v54  ;;  %v812_v42 = vmul.f32 %v602_v55, %v602_v55  ;;  %v881_v46 = vadd.f32 %v880_v31, %v807_v29  ;;  %v923_v60 = vadd.f32 %v922_v36, %v809_v32 }
 0x117   : > { %v443_v58 = vpop.f32.mrf.mxu0  ;;  %v604_v59 = vpop.f32.mrf.mxu1  ;;  %v677_v61 = vadd.f32 %v676_v37, %v441_v54  ;;  %v719_v1 = vadd.f32 %v718_v39, %v602_v55 }
 0x118   : > { %v811_v43 = vmul.f32 %v443_v58, %v443_v58  ;;  %v813_v56 = vmul.f32 %v604_v59, %v604_v59  ;;  %v861_v0 = vadd.f32 %v860_v38, %v810_v33  ;;  %v698_v3 = vadd.f32 %v697_v40, %v443_v58 }
 0x119   : > { %v2849_v4 = vpop.f32.mrf.mxu0  ;;  %v2851_v5 = vpop.f32.mrf.mxu1  ;;  %v740_v48 = vadd.f32 %v739_v41, %v604_v59  ;;  %v903_v6 = vadd.f32 %v902_v45, %v812_v42 }
 0x11a   : > { %v814_v57 = vmul.f32 %v2849_v4, %v2849_v4  ;;  %v816_v49 = vmul.f32 %v2851_v5, %v2851_v5  ;;  %v882_v7 = vadd.f32 %v881_v46, %v811_v43  ;;  %v924_v12 = vadd.f32 %v923_v60, %v813_v56 }
 0x11b   : > { %v449_v14 = vpop.f32.mrf.mxu0  ;;  %v610_v15 = vpop.f32.mrf.mxu1  ;;  %v678_v13 = vadd.f32 %v677_v61, %v2849_v4  ;;  %v720_v55 = vadd.f32 %v719_v1, %v2851_v5 }
 0x11c   : > { %v815_v50 = vmul.f32 %v449_v14, %v449_v14  ;;  %v817_v8 = vmul.f32 %v610_v15, %v610_v15  ;;  %v862_v54 = vadd.f32 %v861_v0, %v814_v57  ;;  %v699_v16 = vadd.f32 %v698_v3, %v449_v14 }
 0x11d   : > { %v453_v24 = vpop.f32.mrf.mxu0  ;;  %v614_v25 = vpop.f32.mrf.mxu1  ;;  %v741_v17 = vadd.f32 %v740_v48, %v610_v15  ;;  %v904_v20 = vadd.f32 %v903_v6, %v816_v49 }
 0x11e   : > { %v818_v9 = vmul.f32 %v453_v24, %v453_v24  ;;  %v820_v58 = vmul.f32 %v614_v25, %v614_v25  ;;  %v883_v21 = vadd.f32 %v882_v7, %v815_v50  ;;  %v925_v26 = vadd.f32 %v924_v12, %v817_v8 }
 0x11f   : > { %v455_v34 = vpop.f32.mrf.mxu0  ;;  %v616_v35 = vpop.f32.mrf.mxu1  ;;  %v679_v27 = vadd.f32 %v678_v13, %v453_v24  ;;  %v721_v29 = vadd.f32 %v720_v55, %v614_v25 }
 0x120   : > { %v819_v59 = vmul.f32 %v455_v34, %v455_v34  ;;  %v821_v22 = vmul.f32 %v616_v35, %v616_v35  ;;  %v863_v28 = vadd.f32 %v862_v54, %v818_v9  ;;  %v700_v4 = vadd.f32 %v699_v16, %v455_v34 }
 0x121   : > { %v459_v44 = vpop.f32.mrf.mxu0  ;;  %v620_v51 = vpop.f32.mrf.mxu1  ;;  %v742_v32 = vadd.f32 %v741_v17, %v616_v35  ;;  %v905_v14 = vadd.f32 %v904_v20, %v820_v58 }
 0x122   : > { %v822_v23 = vmul.f32 %v459_v44, %v459_v44  ;;  %v824_v33 = vmul.f32 %v620_v51, %v620_v51  ;;  %v884_v15 = vadd.f32 %v883_v21, %v819_v59  ;;  %v926_v40 = vadd.f32 %v925_v26, %v821_v22 }
 0x123   : > { %v461_v2 = vpop.f32.mrf.mxu0  ;;  %v622_v47 = vpop.f32.mrf.mxu1  ;;  %v680_v41 = vadd.f32 %v679_v27, %v459_v44  ;;  %v722_v43 = vadd.f32 %v721_v29, %v620_v51 }
 0x124   : > { %v823_v5 = vmul.f32 %v461_v2, %v461_v2  ;;  %v825_v36 = vmul.f32 %v622_v47, %v622_v47  ;;  %v864_v42 = vadd.f32 %v863_v28, %v822_v23  ;;  %v701_v45 = vadd.f32 %v700_v4, %v461_v2 }
 0x125   : > { %v465_v10 = vpop.f32.mrf.mxu0  ;;  %v626_v11 = vpop.f32.mrf.mxu1  ;;  %v743_v24 = vadd.f32 %v742_v32, %v622_v47  ;;  %v906_v34 = vadd.f32 %v905_v14, %v824_v33 }
 0x126   : > { %v826_v37 = vmul.f32 %v465_v10, %v465_v10  ;;  %v828_v46 = vmul.f32 %v626_v11, %v626_v11  ;;  %v885_v35 = vadd.f32 %v884_v15, %v823_v5  ;;  %v927_v0 = vadd.f32 %v926_v40, %v825_v36 }
 0x127   : > { %v467_v18 = vpop.f32.mrf.mxu0  ;;  %v628_v19 = vpop.f32.mrf.mxu1  ;;  %v681_v1 = vadd.f32 %v680_v41, %v465_v10  ;;  %v723_v48 = vadd.f32 %v722_v43, %v626_v11 }
 0x128   : > { %v827_v25 = vmul.f32 %v467_v18, %v467_v18  ;;  %v829_v60 = vmul.f32 %v628_v19, %v628_v19  ;;  %v865_v3 = vadd.f32 %v864_v42, %v826_v37  ;;  %v702_v6 = vadd.f32 %v701_v45, %v467_v18 }
 0x129   : > { %v471_v30 = vpop.f32.mrf.mxu0  ;;  %v632_v31 = vpop.f32.mrf.mxu1  ;;  %v744_v44 = vadd.f32 %v743_v24, %v628_v19  ;;  %v907_v2 = vadd.f32 %v906_v34, %v828_v46 }
 0x12a   : > { %v830_v61 = vmul.f32 %v471_v30, %v471_v30  ;;  %v832_v7 = vmul.f32 %v632_v31, %v632_v31  ;;  %v886_v47 = vadd.f32 %v885_v35, %v827_v25  ;;  %v928_v54 = vadd.f32 %v927_v0, %v829_v60 }
 0x12b   : > { %v473_v38 = vpop.f32.mrf.mxu0  ;;  %v634_v39 = vpop.f32.mrf.mxu1  ;;  %v682_v55 = vadd.f32 %v681_v1, %v471_v30  ;;  %v724_v17 = vadd.f32 %v723_v48, %v632_v31 }
 0x12c   : > { %v831_v51 = vmul.f32 %v473_v38, %v473_v38  ;;  %v833_v8 = vmul.f32 %v634_v39, %v634_v39  ;;  %v866_v16 = vadd.f32 %v865_v3, %v830_v61  ;;  %v703_v58 = vadd.f32 %v702_v6, %v473_v38 }
 0x12d   : > { %v477_v56 = vpop.f32.mrf.mxu0  ;;  %v638_v57 = vpop.f32.mrf.mxu1  ;;  %v745_v10 = vadd.f32 %v744_v44, %v634_v39  ;;  %v908_v18 = vadd.f32 %v907_v2, %v832_v7 }
 0x12e   : > { %v834_v9 = vmul.f32 %v477_v56, %v477_v56  ;;  %v836_v59 = vmul.f32 %v638_v57, %v638_v57  ;;  %v887_v19 = vadd.f32 %v886_v47, %v831_v51  ;;  %v929_v26 = vadd.f32 %v928_v54, %v833_v8 }
 0x12f   : > { %v479_v49 = vpop.f32.mrf.mxu0  ;;  %v640_v50 = vpop.f32.mrf.mxu1  ;;  %v683_v27 = vadd.f32 %v682_v55, %v477_v56  ;;  %v725_v29 = vadd.f32 %v724_v17, %v638_v57 }
 0x130   : > { %v835_v11 = vmul.f32 %v479_v49, %v479_v49  ;;  %v837_v22 = vmul.f32 %v640_v50, %v640_v50  ;;  %v867_v28 = vadd.f32 %v866_v16, %v834_v9  ;;  %v704_v33 = vadd.f32 %v703_v58, %v479_v49 }
 0x131   : > { %v483_v12 = vpop.f32.mrf.mxu0  ;;  %v644_v13 = vpop.f32.mrf.mxu1  ;;  %v746_v30 = vadd.f32 %v745_v10, %v640_v50  ;;  %v909_v14 = vadd.f32 %v908_v18, %v836_v59 }
 0x132   : > { %v838_v23 = vmul.f32 %v483_v12, %v483_v12  ;;  %v840_v5 = vmul.f32 %v644_v13, %v644_v13  ;;  %v888_v15 = vadd.f32 %v887_v19, %v835_v11  ;;  %v684_v36 = vadd.f32 %v683_v27, %v483_v12 }
 0x133   : > { %v485_v20 = vpop.f32.mrf.mxu0  ;;  %v646_v21 = vpop.f32.mrf.mxu1  ;;  %v930_v40 = vadd.f32 %v929_v26, %v837_v22  ;;  %v726_v42 = vadd.f32 %v725_v29, %v644_v13 }
 0x134   : > { %v839_v31 = vmul.f32 %v485_v20, %v485_v20  ;;  %v841_v37 = vmul.f32 %v646_v21, %v646_v21  ;;  %v868_v41 = vadd.f32 %v867_v28, %v838_v23  ;;  %v705_v45 = vadd.f32 %v704_v33, %v485_v20 }
 0x135   : > { %v489_v4 = vpop.f32.mrf.mxu0  ;;  %v650_v32 = vpop.f32.mrf.mxu1  ;;  %v747_v24 = vadd.f32 %v746_v30, %v646_v21  ;;  %v910_v34 = vadd.f32 %v909_v14, %v840_v5 }
 0x136   : > { %v842_v43 = vmul.f32 %v489_v4, %v489_v4  ;;  %v844_v46 = vmul.f32 %v650_v32, %v650_v32  ;;  %v889_v35 = vadd.f32 %v888_v15, %v839_v31  ;;  %v931_v0 = vadd.f32 %v930_v40, %v841_v37 }
 0x137   : > { %v491_v38 = vpop.f32.mrf.mxu0  ;;  %v652_v39 = vpop.f32.mrf.mxu1  ;;  %v685_v1 = vadd.f32 %v684_v36, %v489_v4  ;;  %v727_v3 = vadd.f32 %v726_v42, %v650_v32 }
 0x138   : > { %v843_v25 = vmul.f32 %v491_v38, %v491_v38  ;;  %v845_v60 = vmul.f32 %v652_v39, %v652_v39  ;;  %v869_v6 = vadd.f32 %v868_v41, %v842_v43  ;;  %v706_v44 = vadd.f32 %v705_v45, %v491_v38 }
 0x139   : > { %v495_v56 = vpop.f32.mrf.mxu0  ;;  %v656_v57 = vpop.f32.mrf.mxu1  ;;  %v748_v7 = vadd.f32 %v747_v24, %v652_v39  ;;  %v911_v2 = vadd.f32 %v910_v34, %v844_v46 }
 0x13a   : > { %v846_v61 = vmul.f32 %v495_v56, %v495_v56  ;;  %v848_v48 = vmul.f32 %v656_v57, %v656_v57  ;;  %v890_v47 = vadd.f32 %v889_v35, %v843_v25  ;;  %v686_v8 = vadd.f32 %v685_v1, %v495_v56 }
 0x13b   : > { %v497_v49 = vpop.f32.mrf.mxu0  ;;  %v658_v50 = vpop.f32.mrf.mxu1  ;;  %v932_v54 = vadd.f32 %v931_v0, %v845_v60  ;;  %v728_v16 = vadd.f32 %v727_v3, %v656_v57 }
 0x13c   : > { %v847_v51 = vmul.f32 %v497_v49, %v497_v49  ;;  %v849_v9 = vmul.f32 %v658_v50, %v658_v50  ;;  %v870_v55 = vadd.f32 %v869_v6, %v846_v61  ;;  %v912_v58 = vadd.f32 %v911_v2, %v848_v48 }
 0x13d   : > { %v501_v12 = vpop.f32.mrf.mxu0  ;;  %v662_v13 = vpop.f32.mrf.mxu1  ;;  %v707_v10 = vadd.f32 %v706_v44, %v497_v49  ;;  %v749_v59 = vadd.f32 %v748_v7, %v658_v50 }
 0x13e   : > { %v850_v17 = vmul.f32 %v501_v12, %v501_v12  ;;  %v852_v11 = vmul.f32 %v662_v13, %v662_v13  ;;  %v891_v18 = vadd.f32 %v890_v47, %v847_v51  ;;  %v687_v19 = vadd.f32 %v686_v8, %v501_v12 }
 0x13f   : > { %v503_v20 = vpop.f32.mrf.mxu0  ;;  %v664_v21 = vpop.f32.mrf.mxu1  ;;  %v729_v22 = vadd.f32 %v728_v16, %v662_v13  ;;  %v933_v26 = vadd.f32 %v932_v54, %v849_v9 }
 0x140   : > { %v851_v23 = vmul.f32 %v503_v20, %v503_v20  ;;  %v871_v27 = vadd.f32 %v870_v55, %v850_v17  ;;  %v708_v28 = vadd.f32 %v707_v10, %v503_v20  ;;  %v853_v29 = vmul.f32 %v664_v21, %v664_v21 }
 0x141   : > { %v507_v4 = vpop.f32.mrf.mxu0  ;;  %v668_v32 = vpop.f32.mrf.mxu1  ;;  %v750_v33 = vadd.f32 %v749_v59, %v664_v21  ;;  %v913_v14 = vadd.f32 %v912_v58, %v852_v11 }
 0x142   : > { %v688_v30 = vadd.f32 %v687_v19, %v507_v4  ;;  %v854_v5 = vmul.f32 %v507_v4, %v507_v4  ;;  %v730_v31 = vadd.f32 %v729_v22, %v668_v32  ;;  %v892_v15 = vadd.f32 %v891_v18, %v851_v23 }
 0x143   : > { %v934_v36 = vadd.f32 %v933_v26, %v853_v29  ;;  %v856_v37 = vmul.f32 %v668_v32, %v668_v32  ;;  %v509_v38 = vpop.f32.mrf.mxu0  ;;  %v670_v39 = vpop.f32.mrf.mxu1  ;;  %v769_v4 = vsub.s32 %v766_v62, %v2847_v63  ;;  %v793_v63 = vld [vmem:[#allocation3] sm:$0xf] }
 0x144   : > { %v689_v40 = vrot.slane %v688_v30, 4  ;;  %v872_v41 = vadd.f32 %v871_v27, %v854_v5  ;;  %v731_v42 = vrot.slane %v730_v31, 4  ;;  %v709_v43 = vadd.f32 %v708_v28, %v509_v38 }
 0x145   : > { %v914_v45 = vadd.f32 %v913_v14, %v856_v37  ;;  %v855_v24 = vmul.f32 %v509_v38, %v509_v38  ;;  %v751_v46 = vadd.f32 %v750_v33, %v670_v39  ;;  %v857_v25 = vmul.f32 %v670_v39, %v670_v39 }
 0x146   : > { %v690_v56 = vadd.f32 %v689_v40, %v688_v30  ;;  %v873_v57 = vrot.slane %v872_v41, 4  ;;  %v732_v34 = vadd.f32 %v731_v42, %v730_v31  ;;  %v710_v35 = vrot.slane %v709_v43, 4 }
 0x147   : > { %v915_v60 = vrot.slane %v914_v45, 4  ;;  %v893_v61 = vadd.f32 %v892_v15, %v855_v24  ;;  %v752_v0 = vrot.slane %v751_v46, 4  ;;  %v935_v1 = vadd.f32 %v934_v36, %v857_v25 }
 0x148   : > { %v691_v3 = vrot.slane %v690_v56, 2  ;;  %v874_v48 = vadd.f32 %v873_v57, %v872_v41  ;;  %v733_v49 = vrot.slane %v732_v34, 2  ;;  %v711_v50 = vadd.f32 %v710_v35, %v709_v43 }
 0x149   : > { %v916_v6 = vadd.f32 %v915_v60, %v914_v45  ;;  %v894_v44 = vrot.slane %v893_v61, 4  ;;  %v753_v7 = vadd.f32 %v752_v0, %v751_v46  ;;  %v936_v51 = vrot.slane %v935_v1, 4  ;;  %v673_v46 = vld [vmem:[#allocation2] sm:$0xf] }
 0x14a   : > { %v692_v2 = vadd.f32 %v691_v3, %v690_v56  ;;  %v875_v47 = vrot.slane %v874_v48, 2  ;;  %v734_v8 = vadd.f32 %v733_v49, %v732_v34  ;;  %v712_v9 = vrot.slane %v711_v50, 2 }
 0x14b   : > { %v917_v12 = vrot.slane %v916_v6, 2  ;;  %v895_v13 = vadd.f32 %v894_v44, %v893_v61  ;;  %v754_v54 = vrot.slane %v753_v7, 2  ;;  %v937_v55 = vadd.f32 %v936_v51, %v935_v1 }
 0x14c   : > { %v693_v16 = vrot.slane %v692_v2, 1  ;;  %v876_v17 = vadd.f32 %v875_v47, %v874_v48  ;;  %v735_v58 = vrot.slane %v734_v8, 1  ;;  %v713_v10 = vadd.f32 %v712_v9, %v711_v50 }
 0x14d   : > { %v918_v59 = vadd.f32 %v917_v12, %v916_v6  ;;  %v896_v11 = vrot.slane %v895_v13, 2  ;;  %v755_v20 = vadd.f32 %v754_v54, %v753_v7  ;;  %v938_v21 = vrot.slane %v937_v55, 2 }
 0x14e   : > { %v877_v18 = vrot.slane %v876_v17, 1  ;;  %v714_v19 = vrot.slane %v713_v10, 1  ;;  %v694_v28 = vadd.f32 %v693_v16, %v692_v2  ;;  %v736_v32 = vadd.f32 %v735_v58, %v734_v8 }
 0x14f   : > { %v919_v22 = vrot.slane %v918_v59, 1  ;;  %v897_v23 = vadd.f32 %v896_v11, %v895_v13  ;;  %v756_v26 = vrot.slane %v755_v20, 1  ;;  %v939_v27 = vadd.f32 %v938_v21, %v937_v55 }
 0x150   : > { %v715_v29 = vadd.f32 %v714_v19, %v713_v10  ;;  %v878_v31 = vadd.f32 %v877_v18, %v876_v17 }
 0x151   : > { %v898_v33 = vrot.slane %v897_v23, 1  ;;  %v757_v30 = vadd.f32 %v756_v26, %v755_v20  ;;  %v940_v5 = vrot.slane %v939_v27, 1  ;;  %v920_v15 = vadd.f32 %v919_v22, %v918_v59 }
 0x152   : > { %v762_v14 = vcombine.low %v694_v28, %v715_v29 }
 0x153   : > { %v899_v36 = vadd.f32 %v898_v33, %v897_v23  ;;  %v763_v37 = vcombine.low %v736_v32, %v757_v30  ;;  %v941_v38 = vadd.f32 %v940_v5, %v939_v27 }
 0x154   : > { %v770_v39 = vrot.slane %v762_v14, %v769_v4 }
 0x155   : > { %v946_v40 = vcombine.low %v878_v31, %v899_v36  ;;  %v777_v41 = vrot.slane %v763_v37, %v769_v4  ;;  %v947_v42 = vcombine.low %v920_v15, %v941_v38 }
 0x157   : > { %v954_v43 = vrot.slane %v946_v40, %v769_v4  ;;  %v778_v45 = vcombine.low %v770_v39, %v777_v41  ;;  %v961_v24 = vrot.slane %v947_v42, %v769_v4 }
 0x159   : > { %v785_v52 = vrot.slane %v778_v45, %v769_v4  ;;  %v962_v62 = vcombine.low %v954_v43, %v961_v24 }
 0x15b   : > { %v787_v25 = vadd.f32 %v785_v52, %v673_v46  ;;  %v969_v56 = vrot.slane %v962_v62, %v769_v4 }
 0x15d   : > { %792 = vst.msk [vmem:[#allocation2] sm:$0xf] %vm790_vm2, %v787_v25  ;;  %v971_v57 = vadd.f32 %v969_v56, %v793_v63 }
 0x15f   : > { %972 = vst.msk [vmem:[#allocation3] sm:$0xf] %vm790_vm2, %v971_v57 }
 0x160 PF: > { %p2154_p12 = scmp.ne.s32.totalorder %s2556_s22, 1 }
 0x161   : > { %p2155_p13 = scmp.ne.s32.totalorder (!%p2154_p12), %s2552_s21, 0 }
 0x162   : > { %976 = sbr.rel (%p2154_p12) target bundleno = 869 (0x365), region = 56 }
 0x167   : > { %980 = sbr.rel (%p2155_p13) target bundleno = 396 (0x18c), region = 60 }
 0x16c   : > { %v981_v34 = vld [vmem:[#allocation2] sm:$0xf]  ;;  %v983_v35 = vld [vmem:[#allocation3] sm:$0xf]  ;;  %v992_v48 = vlaneseq }
 0x16d   : > { %v982_v60 = vmul.f32 0.00390625, %v981_v34  ;;  %v984_v61 = vmul.f32 0.00390625, %v983_v35  ;;  %v988_v49 = vld [vmem:[%s3224_s2] sm:$0xf] }
 0x16e   : > { %vm994_vm3 = vcmp.lt.s32.totalorder %v992_v48, 512  ;;  %v997_v44 = vld [vmem:[%s3225_s3] sm:$0xf] }
 0x16f   : > { %v985_v0 = vmul.f32 %v982_v60, %v982_v60 }
 0x171   : > { %v986_v1 = vsub.f32 %v984_v61, %v985_v0 }
 0x173   : > { %v987_v53 = vmax.f32 %v986_v1, 0.0 }
 0x175   : > { %v989_v3 = vadd.f32 1e-05, %v987_v53 }
 0x177   : > { %2444 = vrsqrt.f32 %v989_v3 }
 0x184   : > { %v2445_v50 = vpop.eup %2444 }
 0x185   : > { %v991_v6 = vmul.f32 %v2445_v50, %v988_v49 }
 0x187   : > { %996 = vst.msk [vmem:[#allocation4] sm:$0xf] %vm994_vm3, %v991_v6  ;;  %v998_v7 = vmul.f32 %v991_v6, %v982_v60 }
 0x189   : > { %v999_v51 = vsub.f32 %v997_v44, %v998_v7 }
 0x18b   : > { %1000 = vst.msk [vmem:[#allocation5] sm:$0xf] %vm994_vm3, %v999_v51 }
 0x18c PF: > { %v1030_v2 = vld [vmem:[%s3223_s1 + $0x68] sm:$0xff]  ;;  %v1032_v47 = vld [vmem:[%s3223_s1 + $0x78] sm:$0xff]  ;;  %v1029_v8 = vld [vmem:[%s3223_s1 + $0x60] sm:$0xff]  ;;  %vm1033_vm4 = vcmask 261120   ;;  %v2576_v19 = vmov 0.0  }
 0x18d   : > { %1106 = vmatprep.subr.mxu0 %v1030_v2  ;;  %1267 = vmatprep.subr.mxu1 %v1032_v47  ;;  %v1031_v9 = vld [vmem:[%s3223_s1 + $0x70] sm:$0xff]  ;;  %v1026_v12 = vld [vmem:[%s3223_s1 + $0x48] sm:$0xff]  ;;  %v1028_v13 = vld [vmem:[%s3223_s1 + $0x58] sm:$0xff] }
 0x18e   : > { %1107 = vmatpush1.msra.mxu0 %v1029_v8  ;;  %1268 = vmatpush1.msra.mxu1 %v1031_v9  ;;  %v1025_v54 = vld [vmem:[%s3223_s1 + $0x40] sm:$0xff]  ;;  %v1027_v55 = vld [vmem:[%s3223_s1 + $0x50] sm:$0xff]  ;;  %v1022_v16 = vld [vmem:[%s3223_s1 + $0x28] sm:$0xff] }
 0x18f   : > { %1108 = vmatprep.subr.mxu0 %v1026_v12  ;;  %1269 = vmatprep.subr.mxu1 %v1028_v13  ;;  %v1024_v17 = vld [vmem:[%s3223_s1 + $0x38] sm:$0xff]  ;;  %v1021_v58 = vld [vmem:[%s3223_s1 + $0x20] sm:$0xff]  ;;  %v1023_v10 = vld [vmem:[%s3223_s1 + $0x30] sm:$0xff] }
 0x190   : > { %1109 = vmatpush1.msra.mxu0 %v1025_v54  ;;  %1270 = vmatpush1.msra.mxu1 %v1027_v55  ;;  %v1018_v59 = vld [vmem:[%s3223_s1 + $0x8] sm:$0xff]  ;;  %v1020_v11 = vld [vmem:[%s3223_s1 + $0x18] sm:$0xff]  ;;  %v1017_v20 = vld [vmem:[%s3223_s1] sm:$0xff] }
 0x191   : > { %1110 = vmatprep.subr.mxu0 %v1022_v16  ;;  %1271 = vmatprep.subr.mxu1 %v1024_v17  ;;  %v1019_v21 = vld [vmem:[%s3223_s1 + $0x10] sm:$0xff]  ;;  %v1001_v18 = vld [vmem:[%s2709_s10] sm:$0xff]  ;;  %v1002_v22 = vld [vmem:[%s2709_s10 + $0x8] sm:$0xff] }
 0x192   : > { %1111 = vmatpush1.msra.mxu0 %v1021_v58  ;;  %1272 = vmatpush1.msra.mxu1 %v1023_v10  ;;  %v1671_v23 = vld [vmem:[#allocation6 + $0xf8] sm:$0xff]  ;;  %v1670_v29 = vld [vmem:[#allocation6 + $0xf0] sm:$0xff]  ;;  %v1003_v30 = vld [vmem:[%s2709_s10 + $0x10] sm:$0xff] }
 0x193   : > { %1112 = vmatprep.subr.mxu0 %v1018_v59  ;;  %1273 = vmatprep.subr.mxu1 %v1020_v11  ;;  %v1703_v26 = vld [vmem:[#allocation6 + $0x1f8] sm:$0xff]  ;;  %v1702_v4 = vld [vmem:[#allocation6 + $0x1f0] sm:$0xff]  ;;  %v1669_v5 = vld [vmem:[#allocation6 + $0xe8] sm:$0xff] }
 0x194   : > { %1113 = vmatpush1.msra.mxu0 %v1017_v20  ;;  %1146 = vmatprep.mubr.f32.mxu0 %v2576_v19  ;;  %v1655_v27 = vld [vmem:[#allocation6 + $0x78] sm:$0xff]  ;;  %v1654_v32 = vld [vmem:[#allocation6 + $0x70] sm:$0xff]  ;;  %v1701_v31 = vld [vmem:[#allocation6 + $0x1e8] sm:$0xff] }
 0x195   : > { %1274 = vmatpush1.msra.mxu1 %v1019_v21  ;;  %1307 = vmatprep.mubr.f32.mxu1 %v2576_v19  ;;  %v1687_v28 = vld [vmem:[#allocation6 + $0x178] sm:$0xff]  ;;  %v1686_v33 = vld [vmem:[#allocation6 + $0x170] sm:$0xff]  ;;  %v1653_v14 = vld [vmem:[#allocation6 + $0x68] sm:$0xff] }
 0x196   : > { %2156 = vmatmul.mubr.msk.f32.vlgmr.msra.gmra.mxu0 %vm1033_vm4, %v1001_v18  ;;  %2172 = vmatmul.mubr.msk.f32.vlgmr.msra.gmra.mxu1 %vm1033_vm4, %v1001_v18  ;;  %v1685_v15 = vld [vmem:[#allocation6 + $0x168] sm:$0xff]  ;;  %v1668_v37 = vld [vmem:[#allocation6 + $0xe0] sm:$0xff]  ;;  %v1005_v41 = vld [vmem:[%s2709_s10 + $0x20] sm:$0xff] }
 0x197   : > { %1152 = vmatprep.mubr.f32.mxu0 %v2576_v19  ;;  %1313 = vmatprep.mubr.f32.mxu1 %v2576_v19  ;;  %v1004_v36 = vld [vmem:[%s2709_s10 + $0x18] sm:$0xff]  ;;  %v1700_v38 = vld [vmem:[#allocation6 + $0x1e0] sm:$0xff]  ;;  %v1667_v42 = vld [vmem:[#allocation6 + $0xd8] sm:$0xff] }
 0x198   : > { %2194 = vmatprep.subr.mxu0 %v1671_v23  ;;  %2274 = vmatprep.subr.mxu1 %v1703_v26  ;;  %v1652_v39 = vld [vmem:[#allocation6 + $0x60] sm:$0xff]  ;;  %v1699_v43 = vld [vmem:[#allocation6 + $0x1d8] sm:$0xff]  ;;  %v1666_v52 = vld [vmem:[#allocation6 + $0xd0] sm:$0xff] }
 0x199   : > { %2195 = vmatpush3.msra.mxu0 %v1655_v27  ;;  %2275 = vmatpush3.msra.mxu1 %v1687_v28  ;;  %v1684_v40 = vld [vmem:[#allocation6 + $0x160] sm:$0xff]  ;;  %v1651_v45 = vld [vmem:[#allocation6 + $0x58] sm:$0xff]  ;;  %v1698_v62 = vld [vmem:[#allocation6 + $0x1d0] sm:$0xff] }
 0x19a   : > { %2157 = vmatmul.mubr.msk.f32.gmra.mxu0 %vm1033_vm4, %v1002_v22  ;;  %2173 = vmatmul.mubr.msk.f32.gmra.mxu1 %vm1033_vm4, %v1002_v22  ;;  %v1683_v24 = vld [vmem:[#allocation6 + $0x158] sm:$0xff]  ;;  %v1650_v63 = vld [vmem:[#allocation6 + $0x50] sm:$0xff]  ;;  %v1007_v56 = vld [vmem:[%s2709_s10 + $0x30] sm:$0xff] }
 0x19b   : > { %1158 = vmatprep.mubr.f32.mxu0 %v2576_v19  ;;  %1319 = vmatprep.mubr.f32.mxu1 %v2576_v19  ;;  %v1006_v46 = vld [vmem:[%s2709_s10 + $0x28] sm:$0xff]  ;;  %v1682_v25 = vld [vmem:[#allocation6 + $0x150] sm:$0xff]  ;;  %v1665_v57 = vld [vmem:[#allocation6 + $0xc8] sm:$0xff] }
 0x19c   : > { %2196 = vmatprep.subr.mxu0 %v1670_v29  ;;  %2276 = vmatprep.subr.mxu1 %v1702_v4  ;;  %v1697_v34 = vld [vmem:[#allocation6 + $0x1c8] sm:$0xff]  ;;  %v1664_v0 = vld [vmem:[#allocation6 + $0xc0] sm:$0xff]  ;;  %v1009_v48 = vld [vmem:[%s2709_s10 + $0x40] sm:$0xff] }
 0x19d   : > { %2197 = vmatpush3.msra.mxu0 %v1654_v32  ;;  %2277 = vmatpush3.msra.mxu1 %v1686_v33  ;;  %v1649_v35 = vld [vmem:[#allocation6 + $0x48] sm:$0xff]  ;;  %v1696_v1 = vld [vmem:[#allocation6 + $0x1c0] sm:$0xff]  ;;  %v1663_v49 = vld [vmem:[#allocation6 + $0xb8] sm:$0xff] }
 0x19e   : > { %2158 = vmatmul.mubr.msk.f32.gmra.mxu0 %vm1033_vm4, %v1003_v30  ;;  %2174 = vmatmul.mubr.msk.f32.gmra.mxu1 %vm1033_vm4, %v1003_v30  ;;  %v1681_v60 = vld [vmem:[#allocation6 + $0x148] sm:$0xff]  ;;  %v1648_v53 = vld [vmem:[#allocation6 + $0x40] sm:$0xff]  ;;  %v1695_v50 = vld [vmem:[#allocation6 + $0x1b8] sm:$0xff] }
 0x19f   : > { %1164 = vmatprep.mubr.f32.mxu0 %v2576_v19  ;;  %1325 = vmatprep.mubr.f32.mxu1 %v2576_v19  ;;  %v1008_v61 = vld [vmem:[%s2709_s10 + $0x38] sm:$0xff]  ;;  %v1680_v3 = vld [vmem:[#allocation6 + $0x140] sm:$0xff]  ;;  %v1647_v6 = vld [vmem:[#allocation6 + $0x38] sm:$0xff] }
 0x1a0   : > { %2198 = vmatprep.subr.mxu0 %v1669_v5  ;;  %2278 = vmatprep.subr.mxu1 %v1701_v31  ;;  %v1679_v44 = vld [vmem:[#allocation6 + $0x138] sm:$0xff]  ;;  %v1662_v51 = vld [vmem:[#allocation6 + $0xb0] sm:$0xff]  ;;  %v1011_v9 = vld [vmem:[%s2709_s10 + $0x50] sm:$0xff] }
 0x1a1   : > { %2199 = vmatpush3.msra.mxu0 %v1653_v14  ;;  %2279 = vmatpush3.msra.mxu1 %v1685_v15  ;;  %v1010_v7 = vld [vmem:[%s2709_s10 + $0x48] sm:$0xff]  ;;  %v1694_v2 = vld [vmem:[#allocation6 + $0x1b0] sm:$0xff]  ;;  %v1661_v12 = vld [vmem:[#allocation6 + $0xa8] sm:$0xff] }
 0x1a2   : > { %2159 = vmatmul.mubr.msk.f32.gmra.mxu0 %vm1033_vm4, %v1004_v36  ;;  %2175 = vmatmul.mubr.msk.f32.gmra.mxu1 %vm1033_vm4, %v1004_v36  ;;  %v1646_v47 = vld [vmem:[#allocation6 + $0x30] sm:$0xff]  ;;  %v1693_v13 = vld [vmem:[#allocation6 + $0x1a8] sm:$0xff]  ;;  %v1660_v17 = vld [vmem:[#allocation6 + $0xa0] sm:$0xff] }
 0x1a3   : > { %1170 = vmatprep.mubr.f32.mxu0 %v2576_v19  ;;  %1331 = vmatprep.mubr.f32.mxu1 %v2576_v19  ;;  %v1678_v8 = vld [vmem:[#allocation6 + $0x130] sm:$0xff]  ;;  %v1645_v54 = vld [vmem:[#allocation6 + $0x28] sm:$0xff]  ;;  %v1692_v58 = vld [vmem:[#allocation6 + $0x1a0] sm:$0xff] }
 0x1a4   : > { %2200 = vmatprep.subr.mxu0 %v1668_v37  ;;  %2280 = vmatprep.subr.mxu1 %v1700_v38  ;;  %v1677_v55 = vld [vmem:[#allocation6 + $0x128] sm:$0xff]  ;;  %v1644_v10 = vld [vmem:[#allocation6 + $0x20] sm:$0xff]  ;;  %v1013_v11 = vld [vmem:[%s2709_s10 + $0x60] sm:$0xff] }
 0x1a5   : > { %2201 = vmatpush3.msra.mxu0 %v1652_v39  ;;  %2281 = vmatpush3.msra.mxu1 %v1684_v40  ;;  %v1012_v16 = vld [vmem:[%s2709_s10 + $0x58] sm:$0xff]  ;;  %v1676_v59 = vld [vmem:[#allocation6 + $0x120] sm:$0xff]  ;;  %v1659_v20 = vld [vmem:[#allocation6 + $0x98] sm:$0xff] }
 0x1a6   : > { %2160 = vmatmul.mubr.msk.f32.gmra.mxu0 %vm1033_vm4, %v1005_v41  ;;  %2176 = vmatmul.mubr.msk.f32.gmra.mxu1 %vm1033_vm4, %v1005_v41  ;;  %v1691_v21 = vld [vmem:[#allocation6 + $0x198] sm:$0xff]  ;;  %v1658_v26 = vld [vmem:[#allocation6 + $0x90] sm:$0xff]  ;;  %v1015_v4 = vld [vmem:[%s2709_s10 + $0x70] sm:$0xff] }
 0x1a7   : > { %1176 = vmatprep.mubr.f32.mxu0 %v2576_v19  ;;  %1337 = vmatprep.mubr.f32.mxu1 %v2576_v19  ;;  %v1643_v18 = vld [vmem:[#allocation6 + $0x18] sm:$0xff]  ;;  %v1690_v27 = vld [vmem:[#allocation6 + $0x190] sm:$0xff]  ;;  %v1016_v32 = vld [vmem:[%s2709_s10 + $0x78] sm:$0xff] }
 0x1a8   : > { %2202 = vmatprep.subr.mxu0 %v1667_v42  ;;  %2282 = vmatprep.subr.mxu1 %v1699_v43  ;;  %v1675_v22 = vld [vmem:[#allocation6 + $0x118] sm:$0xff]  ;;  %v1642_v28 = vld [vmem:[#allocation6 + $0x10] sm:$0xff]  ;;  %v1657_v33 = vld [vmem:[#allocation6 + $0x88] sm:$0xff] }
 0x1a9   : > { %2203 = vmatpush3.msra.mxu0 %v1651_v45  ;;  %2283 = vmatpush3.msra.mxu1 %v1683_v24  ;;  %v1014_v23 = vld [vmem:[%s2709_s10 + $0x68] sm:$0xff]  ;;  %v1674_v29 = vld [vmem:[#allocation6 + $0x110] sm:$0xff]  ;;  %v1689_v30 = vld [vmem:[#allocation6 + $0x188] sm:$0xff] }
 0x1aa   : > { %2161 = vmatmul.mubr.msk.f32.gmra.mxu0 %vm1033_vm4, %v1006_v46  ;;  %2177 = vmatmul.mubr.msk.f32.gmra.mxu1 %vm1033_vm4, %v1006_v46  ;;  %v1641_v5 = vld [vmem:[#allocation6 + $0x8] sm:$0xff]  ;;  %v1656_v14 = vld [vmem:[#allocation6 + $0x80] sm:$0xff]  ;;  %v1404_v41 = vld [vmem:[#allocation4] sm:$0xf] }
 0x1ab   : > { %1182 = vmatprep.mubr.f32.mxu0 %v2576_v19  ;;  %1343 = vmatprep.mubr.f32.mxu1 %v2576_v19  ;;  %v1673_v31 = vld [vmem:[#allocation6 + $0x108] sm:$0xff]  ;;  %v1688_v15 = vld [vmem:[#allocation6 + $0x180] sm:$0xff]  ;;  %v1490_v24 = vld [vmem:[#allocation5] sm:$0xf] }
 0x1ac   : > { %2204 = vmatprep.subr.mxu0 %v1666_v52  ;;  %2284 = vmatprep.subr.mxu1 %v1698_v62  ;;  %v1640_v36 = vld [vmem:[#allocation6] sm:$0xff] }
 0x1ad   : > { %2205 = vmatpush3.msra.mxu0 %v1650_v63  ;;  %2285 = vmatpush3.msra.mxu1 %v1682_v25  ;;  %v1672_v37 = vld [vmem:[#allocation6 + $0x100] sm:$0xff] }
 0x1ae   : > { %2162 = vmatmul.mubr.msk.f32.gmra.mxu0 %vm1033_vm4, %v1007_v56  ;;  %2178 = vmatmul.mubr.msk.f32.gmra.mxu1 %vm1033_vm4, %v1007_v56 }
 0x1af   : > { %1188 = vmatprep.mubr.f32.mxu0 %v2576_v19  ;;  %1349 = vmatprep.mubr.f32.mxu1 %v2576_v19 }
 0x1b0   : > { %2206 = vmatprep.subr.mxu0 %v1665_v57  ;;  %2286 = vmatprep.subr.mxu1 %v1697_v34 }
 0x1b1   : > { %2207 = vmatpush3.msra.mxu0 %v1649_v35  ;;  %2287 = vmatpush3.msra.mxu1 %v1681_v60 }
 0x1b2   : > { %2163 = vmatmul.mubr.msk.f32.gmra.mxu0 %vm1033_vm4, %v1008_v61  ;;  %2179 = vmatmul.mubr.msk.f32.gmra.mxu1 %vm1033_vm4, %v1008_v61 }
 0x1b3   : > { %1194 = vmatprep.mubr.f32.mxu0 %v2576_v19  ;;  %1355 = vmatprep.mubr.f32.mxu1 %v2576_v19 }
 0x1b4   : > { %2208 = vmatprep.subr.mxu0 %v1664_v0  ;;  %2288 = vmatprep.subr.mxu1 %v1696_v1 }
 0x1b5   : > { %2209 = vmatpush3.msra.mxu0 %v1648_v53  ;;  %2289 = vmatpush3.msra.mxu1 %v1680_v3 }
 0x1b6   : > { %2164 = vmatmul.mubr.msk.f32.gmra.mxu0 %vm1033_vm4, %v1009_v48  ;;  %2180 = vmatmul.mubr.msk.f32.gmra.mxu1 %vm1033_vm4, %v1009_v48 }
 0x1b7   : > { %1200 = vmatprep.mubr.f32.mxu0 %v2576_v19  ;;  %1361 = vmatprep.mubr.f32.mxu1 %v2576_v19 }
 0x1b8   : > { %2210 = vmatprep.subr.mxu0 %v1663_v49  ;;  %2290 = vmatprep.subr.mxu1 %v1695_v50 }
 0x1b9   : > { %2211 = vmatpush3.msra.mxu0 %v1647_v6  ;;  %2291 = vmatpush3.msra.mxu1 %v1679_v44 }
 0x1ba   : > { %2165 = vmatmul.mubr.msk.f32.gmra.mxu0 %vm1033_vm4, %v1010_v7  ;;  %2181 = vmatmul.mubr.msk.f32.gmra.mxu1 %vm1033_vm4, %v1010_v7 }
 0x1bb   : > { %1206 = vmatprep.mubr.f32.mxu0 %v2576_v19  ;;  %1367 = vmatprep.mubr.f32.mxu1 %v2576_v19 }
 0x1bc   : > { %2212 = vmatprep.subr.mxu0 %v1662_v51  ;;  %2292 = vmatprep.subr.mxu1 %v1694_v2 }
 0x1bd   : > { %2213 = vmatpush3.msra.mxu0 %v1646_v47  ;;  %2293 = vmatpush3.msra.mxu1 %v1678_v8 }
 0x1be   : > { %2166 = vmatmul.mubr.msk.f32.gmra.mxu0 %vm1033_vm4, %v1011_v9  ;;  %2182 = vmatmul.mubr.msk.f32.gmra.mxu1 %vm1033_vm4, %v1011_v9 }
 0x1bf   : > { %1212 = vmatprep.mubr.f32.mxu0 %v2576_v19  ;;  %1373 = vmatprep.mubr.f32.mxu1 %v2576_v19 }
 0x1c0   : > { %2214 = vmatprep.subr.mxu0 %v1661_v12  ;;  %2294 = vmatprep.subr.mxu1 %v1693_v13 }
 0x1c1   : > { %2215 = vmatpush3.msra.mxu0 %v1645_v54  ;;  %2295 = vmatpush3.msra.mxu1 %v1677_v55 }
 0x1c2   : > { %2167 = vmatmul.mubr.msk.f32.gmra.mxu0 %vm1033_vm4, %v1012_v16  ;;  %2183 = vmatmul.mubr.msk.f32.gmra.mxu1 %vm1033_vm4, %v1012_v16 }
 0x1c3   : > { %1218 = vmatprep.mubr.f32.mxu0 %v2576_v19  ;;  %1379 = vmatprep.mubr.f32.mxu1 %v2576_v19 }
 0x1c4   : > { %2216 = vmatprep.subr.mxu0 %v1660_v17  ;;  %2296 = vmatprep.subr.mxu1 %v1692_v58 }
 0x1c5   : > { %2217 = vmatpush3.msra.mxu0 %v1644_v10  ;;  %2297 = vmatpush3.msra.mxu1 %v1676_v59 }
 0x1c6   : > { %2168 = vmatmul.mubr.msk.f32.gmra.mxu0 %vm1033_vm4, %v1013_v11  ;;  %2184 = vmatmul.mubr.msk.f32.gmra.mxu1 %vm1033_vm4, %v1013_v11 }
 0x1c7   : > { %1224 = vmatprep.mubr.f32.mxu0 %v2576_v19  ;;  %1385 = vmatprep.mubr.f32.mxu1 %v2576_v19 }
 0x1c8   : > { %2218 = vmatprep.subr.mxu0 %v1659_v20  ;;  %2298 = vmatprep.subr.mxu1 %v1691_v21 }
 0x1c9   : > { %2219 = vmatpush3.msra.mxu0 %v1643_v18  ;;  %2299 = vmatpush3.msra.mxu1 %v1675_v22 }
 0x1ca   : > { %2169 = vmatmul.mubr.msk.f32.gmra.mxu0 %vm1033_vm4, %v1014_v23  ;;  %2185 = vmatmul.mubr.msk.f32.gmra.mxu1 %vm1033_vm4, %v1014_v23 }
 0x1cb   : > { %1230 = vmatprep.mubr.f32.mxu0 %v2576_v19  ;;  %1391 = vmatprep.mubr.f32.mxu1 %v2576_v19 }
 0x1cc   : > { %2220 = vmatprep.subr.mxu0 %v1658_v26  ;;  %2300 = vmatprep.subr.mxu1 %v1690_v27 }
 0x1cd   : > { %2221 = vmatpush3.msra.mxu0 %v1642_v28  ;;  %2301 = vmatpush3.msra.mxu1 %v1674_v29 }
 0x1ce   : > { %2170 = vmatmul.mubr.msk.f32.gmra.mxu0 %vm1033_vm4, %v1015_v4  ;;  %2186 = vmatmul.mubr.msk.f32.gmra.mxu1 %vm1033_vm4, %v1015_v4 }
 0x1cf   : > { %1236 = vmatprep.mubr.f32.mxu0 %v2576_v19  ;;  %1397 = vmatprep.mubr.f32.mxu1 %v2576_v19  ;;  %v1406_v19 = vlaneseq }
 0x1d0   : > { %2222 = vmatprep.subr.mxu0 %v1657_v33  ;;  %2302 = vmatprep.subr.mxu1 %v1689_v30 }
 0x1d1   : > { %2223 = vmatpush3.msra.mxu0 %v1641_v5  ;;  %2303 = vmatpush3.msra.mxu1 %v1673_v31  ;;  %v1407_v38 = vshrl.u32 %v1406_v19, 7 }
 0x1d2   : > { %2171 = vmatmul.mubr.msk.f32.gmra.mxu0 %vm1033_vm4, %v1016_v32  ;;  %2187 = vmatmul.mubr.msk.f32.gmra.mxu1 %vm1033_vm4, %v1016_v32 }
 0x1d3   : > { %2224 = vmatprep.subr.mxu0 %v1656_v14  ;;  %2304 = vmatprep.subr.mxu1 %v1688_v15  ;;  %v1408_v39 = vsub.s32 0, %v1407_v38  ;;  %v1416_v40 = vsub.s32 2, %v1407_v38  ;;  %v1412_v42 = vsub.s32 1, %v1407_v38  ;;  %v1420_v43 = vsub.s32 3, %v1407_v38 }
 0x1d4   : > { %2225 = vmatpush3.msra.mxu0 %v1640_v36  ;;  %2305 = vmatpush3.msra.mxu1 %v1672_v37 }
 0x1d5   : > { %v2999_v45 = vrot.slane %v1404_v41, %v1408_v39  ;;  %v3001_v46 = vrot.slane %v1404_v41, %v1416_v40  ;;  %v3003_v52 = vrot.slane %v1404_v41, %v1412_v42  ;;  %v3005_v62 = vrot.slane %v1404_v41, %v1420_v43 }
 0x1d6   : > { %v3007_v25 = vrot.slane %v1490_v24, %v1408_v39  ;;  %v3009_v57 = vrot.slane %v1490_v24, %v1416_v40  ;;  %v3013_v60 = vrot.slane %v1490_v24, %v1412_v42  ;;  %v3015_v61 = vrot.slane %v1490_v24, %v1420_v43 }
 0x256   : > { %v1148_v63 = vpop.f32.mrf.mxu0  ;;  %v1309_v56 = vpop.f32.mrf.mxu1 }
 0x257   : > { %v1426_v34 = vmul.f32 %v2999_v45, %v1148_v63  ;;  %v1428_v35 = vmul.f32 %v3001_v46, %v1309_v56 }
 0x258   : > { %v1150_v0 = vpop.f32.mrf.mxu0  ;;  %v1311_v1 = vpop.f32.mrf.mxu1 }
 0x259   : > { %v1427_v53 = vmul.f32 %v3003_v52, %v1150_v0  ;;  %v1429_v3 = vmul.f32 %v3005_v62, %v1311_v1  ;;  %v1512_v48 = vadd.f32 %v3007_v25, %v1426_v34  ;;  %v1514_v49 = vadd.f32 %v3009_v57, %v1428_v35 }
 0x25a   : > { %v1154_v50 = vpop.f32.mrf.mxu0  ;;  %v1315_v6 = vpop.f32.mrf.mxu1 }
 0x25b   : > { %v1513_v44 = vadd.f32 %v3013_v60, %v1427_v53  ;;  %v1515_v7 = vadd.f32 %v3015_v61, %v1429_v3  ;;  %v1430_v51 = vmul.f32 %v2999_v45, %v1154_v50  ;;  %v1432_v2 = vmul.f32 %v3001_v46, %v1315_v6 }
 0x25c   : > { %v1156_v47 = vpop.f32.mrf.mxu0  ;;  %v1317_v8 = vpop.f32.mrf.mxu1  ;;  %v1576_v55 = vmax.f32 %v1512_v48, 0.0  ;;  %v1578_v16 = vmax.f32 %v1514_v49, 0.0 }
 0x25d   : > { %v1577_v9 = vmax.f32 %v1513_v44, 0.0  ;;  %v1579_v12 = vmax.f32 %v1515_v7, 0.0  ;;  %v1431_v13 = vmul.f32 %v3003_v52, %v1156_v47  ;;  %v1433_v54 = vmul.f32 %v3005_v62, %v1317_v8 }
 0x25e   : > { %v1516_v17 = vadd.f32 %v3007_v25, %v1430_v51  ;;  %v1518_v58 = vadd.f32 %v3009_v57, %v1432_v2  ;;  %v1160_v10 = vpop.f32.mrf.mxu0  ;;  %v1321_v59 = vpop.f32.mrf.mxu1 }
 0x25f   : > { %v1517_v11 = vadd.f32 %v3013_v60, %v1431_v13  ;;  %v1519_v20 = vadd.f32 %v3015_v61, %v1433_v54  ;;  %v1434_v21 = vmul.f32 %v2999_v45, %v1160_v10  ;;  %v1436_v18 = vmul.f32 %v3001_v46, %v1321_v59  ;;  %1768 = vmatprep.mubr.f32.mxu0 %v1577_v9 }
 0x260   : > { %1913 = vmatprep.mubr.f32.mxu1 %v1579_v12  ;;  %v1162_v22 = vpop.f32.mrf.mxu0  ;;  %v1323_v23 = vpop.f32.mrf.mxu1  ;;  %1769 = vmatmul.mubr.f32.vlgmr.msra.gmra.mxu0 %v1576_v55  ;;  %v1580_v28 = vmax.f32 %v1516_v17, 0.0  ;;  %v1582_v5 = vmax.f32 %v1518_v58, 0.0 }
 0x261   : > { %v1581_v26 = vmax.f32 %v1517_v11, 0.0  ;;  %v1583_v27 = vmax.f32 %v1519_v20, 0.0  ;;  %1914 = vmatmul.mubr.f32.vlgmr.msra.gmra.mxu1 %v1578_v16  ;;  %v1520_v29 = vadd.f32 %v3007_v25, %v1434_v21  ;;  %v1435_v4 = vmul.f32 %v3003_v52, %v1162_v22 }
 0x262   : > { %v1437_v32 = vmul.f32 %v3005_v62, %v1323_v23  ;;  %v1166_v33 = vpop.f32.mrf.mxu0  ;;  %v1327_v30 = vpop.f32.mrf.mxu1  ;;  %v1522_v31 = vadd.f32 %v3009_v57, %v1436_v18 }
 0x263   : > { %v1438_v14 = vmul.f32 %v2999_v45, %v1166_v33  ;;  %v1440_v15 = vmul.f32 %v3001_v46, %v1327_v30  ;;  %1773 = vmatprep.mubr.f32.mxu0 %v1581_v26  ;;  %1918 = vmatprep.mubr.f32.mxu1 %v1583_v27  ;;  %v1521_v36 = vadd.f32 %v3013_v60, %v1435_v4  ;;  %v1584_v34 = vmax.f32 %v1520_v29, 0.0 }
 0x264   : > { %v1523_v37 = vadd.f32 %v3015_v61, %v1437_v32  ;;  %v1168_v19 = vpop.f32.mrf.mxu0  ;;  %v1329_v38 = vpop.f32.mrf.mxu1  ;;  %1774 = vmatmul.mubr.f32.gmra.mxu0 %v1580_v28  ;;  %v1586_v35 = vmax.f32 %v1522_v31, 0.0 }
 0x265   : > { %v1439_v39 = vmul.f32 %v3003_v52, %v1168_v19  ;;  %v1441_v40 = vmul.f32 %v3005_v62, %v1329_v38  ;;  %1919 = vmatmul.mubr.f32.gmra.mxu1 %v1582_v5  ;;  %v1585_v41 = vmax.f32 %v1521_v36, 0.0  ;;  %v1524_v43 = vadd.f32 %v3007_v25, %v1438_v14 }
 0x266   : > { %v1587_v42 = vmax.f32 %v1523_v37, 0.0  ;;  %v1526_v24 = vadd.f32 %v3009_v57, %v1440_v15  ;;  %v1172_v63 = vpop.f32.mrf.mxu0  ;;  %v1333_v56 = vpop.f32.mrf.mxu1 }
 0x267   : > { %v1525_v0 = vadd.f32 %v3013_v60, %v1439_v39  ;;  %v1527_v1 = vadd.f32 %v3015_v61, %v1441_v40  ;;  %v1442_v53 = vmul.f32 %v2999_v45, %v1172_v63  ;;  %v1444_v3 = vmul.f32 %v3001_v46, %v1333_v56  ;;  %1778 = vmatprep.mubr.f32.mxu0 %v1585_v41 }
 0x268   : > { %1923 = vmatprep.mubr.f32.mxu1 %v1587_v42  ;;  %v1174_v48 = vpop.f32.mrf.mxu0  ;;  %v1335_v49 = vpop.f32.mrf.mxu1  ;;  %1779 = vmatmul.mubr.f32.gmra.mxu0 %v1584_v34  ;;  %v1588_v51 = vmax.f32 %v1524_v43, 0.0  ;;  %v1590_v2 = vmax.f32 %v1526_v24, 0.0 }
 0x269   : > { %v1589_v50 = vmax.f32 %v1525_v0, 0.0  ;;  %v1591_v6 = vmax.f32 %v1527_v1, 0.0  ;;  %v1443_v44 = vmul.f32 %v3003_v52, %v1174_v48  ;;  %v1445_v7 = vmul.f32 %v3005_v62, %v1335_v49  ;;  %1924 = vmatmul.mubr.f32.gmra.mxu1 %v1586_v35 }
 0x26a   : > { %v1528_v47 = vadd.f32 %v3007_v25, %v1442_v53  ;;  %v1178_v8 = vpop.f32.mrf.mxu0  ;;  %v1339_v9 = vpop.f32.mrf.mxu1  ;;  %v1530_v12 = vadd.f32 %v3009_v57, %v1444_v3 }
 0x26b   : > { %v1529_v13 = vadd.f32 %v3013_v60, %v1443_v44  ;;  %v1531_v54 = vadd.f32 %v3015_v61, %v1445_v7  ;;  %v1446_v55 = vmul.f32 %v2999_v45, %v1178_v8  ;;  %1783 = vmatprep.mubr.f32.mxu0 %v1589_v50  ;;  %v1448_v16 = vmul.f32 %v3001_v46, %v1339_v9 }
 0x26c   : > { %1928 = vmatprep.mubr.f32.mxu1 %v1591_v6  ;;  %v1180_v17 = vpop.f32.mrf.mxu0  ;;  %v1341_v58 = vpop.f32.mrf.mxu1  ;;  %1784 = vmatmul.mubr.f32.gmra.mxu0 %v1588_v51  ;;  %v1592_v22 = vmax.f32 %v1528_v47, 0.0  ;;  %v1594_v23 = vmax.f32 %v1530_v12, 0.0 }
 0x26d   : > { %v1593_v10 = vmax.f32 %v1529_v13, 0.0  ;;  %v1595_v59 = vmax.f32 %v1531_v54, 0.0  ;;  %1929 = vmatmul.mubr.f32.gmra.mxu1 %v1590_v2  ;;  %v1447_v11 = vmul.f32 %v3003_v52, %v1180_v17  ;;  %v1449_v20 = vmul.f32 %v3005_v62, %v1341_v58 }
 0x26e   : > { %v1184_v21 = vpop.f32.mrf.mxu0  ;;  %v1345_v18 = vpop.f32.mrf.mxu1  ;;  %v1532_v26 = vadd.f32 %v3007_v25, %v1446_v55  ;;  %v1534_v28 = vadd.f32 %v3009_v57, %v1448_v16 }
 0x26f   : > { %v1450_v27 = vmul.f32 %v2999_v45, %v1184_v21  ;;  %1788 = vmatprep.mubr.f32.mxu0 %v1593_v10  ;;  %1933 = vmatprep.mubr.f32.mxu1 %v1595_v59  ;;  %v1533_v29 = vadd.f32 %v3013_v60, %v1447_v11  ;;  %v1535_v4 = vadd.f32 %v3015_v61, %v1449_v20 }
 0x270   : > { %v1452_v32 = vmul.f32 %v3001_v46, %v1345_v18  ;;  %v1186_v33 = vpop.f32.mrf.mxu0  ;;  %v1347_v30 = vpop.f32.mrf.mxu1  ;;  %1789 = vmatmul.mubr.f32.gmra.mxu0 %v1592_v22  ;;  %v1596_v38 = vmax.f32 %v1532_v26, 0.0  ;;  %v1598_v41 = vmax.f32 %v1534_v28, 0.0 }
 0x271   : > { %v1451_v5 = vmul.f32 %v3003_v52, %v1186_v33  ;;  %v1453_v31 = vmul.f32 %v3005_v62, %v1347_v30  ;;  %v1597_v14 = vmax.f32 %v1533_v29, 0.0  ;;  %v1599_v15 = vmax.f32 %v1535_v4, 0.0  ;;  %1934 = vmatmul.mubr.f32.gmra.mxu1 %v1594_v23 }
 0x272   : > { %v1536_v36 = vadd.f32 %v3007_v25, %v1450_v27  ;;  %v1190_v37 = vpop.f32.mrf.mxu0  ;;  %v1351_v19 = vpop.f32.mrf.mxu1  ;;  %v1538_v42 = vadd.f32 %v3009_v57, %v1452_v32 }
 0x273   : > { %v1537_v39 = vadd.f32 %v3013_v60, %v1451_v5  ;;  %v1539_v40 = vadd.f32 %v3015_v61, %v1453_v31  ;;  %v1454_v43 = vmul.f32 %v2999_v45, %v1190_v37  ;;  %v1456_v24 = vmul.f32 %v3001_v46, %v1351_v19  ;;  %1793 = vmatprep.mubr.f32.mxu0 %v1597_v14 }
 0x274   : > { %1938 = vmatprep.mubr.f32.mxu1 %v1599_v15  ;;  %v1192_v63 = vpop.f32.mrf.mxu0  ;;  %v1353_v56 = vpop.f32.mrf.mxu1  ;;  %1794 = vmatmul.mubr.f32.gmra.mxu0 %v1596_v38  ;;  %v1600_v53 = vmax.f32 %v1536_v36, 0.0  ;;  %v1602_v51 = vmax.f32 %v1538_v42, 0.0 }
 0x275   : > { %v1601_v34 = vmax.f32 %v1537_v39, 0.0  ;;  %v1603_v35 = vmax.f32 %v1539_v40, 0.0  ;;  %v1455_v0 = vmul.f32 %v3003_v52, %v1192_v63  ;;  %v1457_v1 = vmul.f32 %v3005_v62, %v1353_v56  ;;  %1939 = vmatmul.mubr.f32.gmra.mxu1 %v1598_v41 }
 0x276   : > { %v1540_v3 = vadd.f32 %v3007_v25, %v1454_v43  ;;  %v1196_v48 = vpop.f32.mrf.mxu0  ;;  %v1357_v49 = vpop.f32.mrf.mxu1  ;;  %v1542_v50 = vadd.f32 %v3009_v57, %v1456_v24 }
 0x277   : > { %v1541_v6 = vadd.f32 %v3013_v60, %v1455_v0  ;;  %v1543_v44 = vadd.f32 %v3015_v61, %v1457_v1  ;;  %v1458_v7 = vmul.f32 %v2999_v45, %v1196_v48  ;;  %1798 = vmatprep.mubr.f32.mxu0 %v1601_v34  ;;  %v1460_v2 = vmul.f32 %v3001_v46, %v1357_v49 }
 0x278   : > { %1943 = vmatprep.mubr.f32.mxu1 %v1603_v35  ;;  %v1198_v47 = vpop.f32.mrf.mxu0  ;;  %v1359_v8 = vpop.f32.mrf.mxu1  ;;  %1799 = vmatmul.mubr.f32.gmra.mxu0 %v1600_v53  ;;  %v1604_v17 = vmax.f32 %v1540_v3, 0.0  ;;  %v1606_v58 = vmax.f32 %v1542_v50, 0.0 }
 0x279   : > { %v1605_v9 = vmax.f32 %v1541_v6, 0.0  ;;  %v1607_v12 = vmax.f32 %v1543_v44, 0.0  ;;  %v1459_v13 = vmul.f32 %v3003_v52, %v1198_v47  ;;  %v1461_v54 = vmul.f32 %v3005_v62, %v1359_v8  ;;  %1944 = vmatmul.mubr.f32.gmra.mxu1 %v1602_v51 }
 0x27a   : > { %v1202_v55 = vpop.f32.mrf.mxu0  ;;  %v1363_v16 = vpop.f32.mrf.mxu1  ;;  %v1544_v10 = vadd.f32 %v3007_v25, %v1458_v7  ;;  %v1546_v11 = vadd.f32 %v3009_v57, %v1460_v2 }
 0x27b   : > { %v1462_v59 = vmul.f32 %v2999_v45, %v1202_v55  ;;  %1803 = vmatprep.mubr.f32.mxu0 %v1605_v9  ;;  %1948 = vmatprep.mubr.f32.mxu1 %v1607_v12  ;;  %v1545_v20 = vadd.f32 %v3013_v60, %v1459_v13  ;;  %v1547_v21 = vadd.f32 %v3015_v61, %v1461_v54 }
 0x27c   : > { %v1464_v18 = vmul.f32 %v3001_v46, %v1363_v16  ;;  %v1204_v22 = vpop.f32.mrf.mxu0  ;;  %v1365_v23 = vpop.f32.mrf.mxu1  ;;  %1804 = vmatmul.mubr.f32.gmra.mxu0 %v1604_v17  ;;  %v1608_v30 = vmax.f32 %v1544_v10, 0.0  ;;  %v1610_v14 = vmax.f32 %v1546_v11, 0.0 }
 0x27d   : > { %v1463_v26 = vmul.f32 %v3003_v52, %v1204_v22  ;;  %v1465_v27 = vmul.f32 %v3005_v62, %v1365_v23  ;;  %v1609_v28 = vmax.f32 %v1545_v20, 0.0  ;;  %v1611_v29 = vmax.f32 %v1547_v21, 0.0  ;;  %1949 = vmatmul.mubr.f32.gmra.mxu1 %v1606_v58 }
 0x27e   : > { %v1548_v4 = vadd.f32 %v3007_v25, %v1462_v59  ;;  %v1208_v32 = vpop.f32.mrf.mxu0  ;;  %v1369_v33 = vpop.f32.mrf.mxu1  ;;  %v1550_v15 = vadd.f32 %v3009_v57, %v1464_v18 }
 0x27f   : > { %v1549_v5 = vadd.f32 %v3013_v60, %v1463_v26  ;;  %v1551_v31 = vadd.f32 %v3015_v61, %v1465_v27  ;;  %v1466_v36 = vmul.f32 %v2999_v45, %v1208_v32  ;;  %v1468_v37 = vmul.f32 %v3001_v46, %v1369_v33  ;;  %1808 = vmatprep.mubr.f32.mxu0 %v1609_v28 }
 0x280   : > { %1953 = vmatprep.mubr.f32.mxu1 %v1611_v29  ;;  %v1210_v19 = vpop.f32.mrf.mxu0  ;;  %v1371_v38 = vpop.f32.mrf.mxu1  ;;  %1809 = vmatmul.mubr.f32.gmra.mxu0 %v1608_v30  ;;  %v1612_v43 = vmax.f32 %v1548_v4, 0.0  ;;  %v1614_v53 = vmax.f32 %v1550_v15, 0.0 }
 0x281   : > { %v1613_v39 = vmax.f32 %v1549_v5, 0.0  ;;  %v1615_v40 = vmax.f32 %v1551_v31, 0.0  ;;  %v1467_v41 = vmul.f32 %v3003_v52, %v1210_v19  ;;  %v1469_v42 = vmul.f32 %v3005_v62, %v1371_v38  ;;  %1954 = vmatmul.mubr.f32.gmra.mxu1 %v1610_v14 }
 0x282   : > { %v1552_v24 = vadd.f32 %v3007_v25, %v1466_v36  ;;  %v1214_v63 = vpop.f32.mrf.mxu0  ;;  %v1375_v56 = vpop.f32.mrf.mxu1  ;;  %v1554_v34 = vadd.f32 %v3009_v57, %v1468_v37 }
 0x283   : > { %v1553_v35 = vadd.f32 %v3013_v60, %v1467_v41  ;;  %v1555_v0 = vadd.f32 %v3015_v61, %v1469_v42  ;;  %v1470_v1 = vmul.f32 %v2999_v45, %v1214_v63  ;;  %1813 = vmatprep.mubr.f32.mxu0 %v1613_v39  ;;  %v1472_v3 = vmul.f32 %v3001_v46, %v1375_v56 }
 0x284   : > { %1958 = vmatprep.mubr.f32.mxu1 %v1615_v40  ;;  %v1216_v48 = vpop.f32.mrf.mxu0  ;;  %v1377_v49 = vpop.f32.mrf.mxu1  ;;  %1814 = vmatmul.mubr.f32.gmra.mxu0 %v1612_v43  ;;  %v1616_v47 = vmax.f32 %v1552_v24, 0.0  ;;  %v1618_v8 = vmax.f32 %v1554_v34, 0.0 }
 0x285   : > { %v1617_v50 = vmax.f32 %v1553_v35, 0.0  ;;  %v1619_v6 = vmax.f32 %v1555_v0, 0.0  ;;  %v1471_v44 = vmul.f32 %v3003_v52, %v1216_v48  ;;  %v1473_v7 = vmul.f32 %v3005_v62, %v1377_v49  ;;  %1959 = vmatmul.mubr.f32.gmra.mxu1 %v1614_v53 }
 0x286   : > { %v1220_v51 = vpop.f32.mrf.mxu0  ;;  %v1381_v2 = vpop.f32.mrf.mxu1  ;;  %v1556_v9 = vadd.f32 %v3007_v25, %v1470_v1  ;;  %v1558_v13 = vadd.f32 %v3009_v57, %v1472_v3 }
 0x287   : > { %v1474_v12 = vmul.f32 %v2999_v45, %v1220_v51  ;;  %1818 = vmatprep.mubr.f32.mxu0 %v1617_v50  ;;  %1963 = vmatprep.mubr.f32.mxu1 %v1619_v6  ;;  %v1557_v54 = vadd.f32 %v3013_v60, %v1471_v44  ;;  %v1559_v55 = vadd.f32 %v3015_v61, %v1473_v7 }
 0x288   : > { %v1476_v16 = vmul.f32 %v3001_v46, %v1381_v2  ;;  %v1222_v17 = vpop.f32.mrf.mxu0  ;;  %v1383_v58 = vpop.f32.mrf.mxu1  ;;  %1819 = vmatmul.mubr.f32.gmra.mxu0 %v1616_v47  ;;  %v1620_v23 = vmax.f32 %v1556_v9, 0.0  ;;  %v1622_v28 = vmax.f32 %v1558_v13, 0.0 }
 0x289   : > { %v1475_v10 = vmul.f32 %v3003_v52, %v1222_v17  ;;  %v1477_v59 = vmul.f32 %v3005_v62, %v1383_v58  ;;  %v1621_v11 = vmax.f32 %v1557_v54, 0.0  ;;  %v1623_v20 = vmax.f32 %v1559_v55, 0.0  ;;  %1964 = vmatmul.mubr.f32.gmra.mxu1 %v1618_v8 }
 0x28a   : > { %v1560_v21 = vadd.f32 %v3007_v25, %v1474_v12  ;;  %v1226_v18 = vpop.f32.mrf.mxu0  ;;  %v1387_v22 = vpop.f32.mrf.mxu1  ;;  %v1562_v29 = vadd.f32 %v3009_v57, %v1476_v16 }
 0x28b   : > { %v1561_v26 = vadd.f32 %v3013_v60, %v1475_v10  ;;  %v1563_v27 = vadd.f32 %v3015_v61, %v1477_v59  ;;  %v1478_v4 = vmul.f32 %v2999_v45, %v1226_v18  ;;  %v1480_v32 = vmul.f32 %v3001_v46, %v1387_v22  ;;  %1823 = vmatprep.mubr.f32.mxu0 %v1621_v11 }
 0x28c   : > { %1968 = vmatprep.mubr.f32.mxu1 %v1623_v20  ;;  %v1228_v33 = vpop.f32.mrf.mxu0  ;;  %v1389_v30 = vpop.f32.mrf.mxu1  ;;  %1824 = vmatmul.mubr.f32.gmra.mxu0 %v1620_v23  ;;  %v1624_v36 = vmax.f32 %v1560_v21, 0.0  ;;  %v1626_v43 = vmax.f32 %v1562_v29, 0.0 }
 0x28d   : > { %v1625_v5 = vmax.f32 %v1561_v26, 0.0  ;;  %v1627_v31 = vmax.f32 %v1563_v27, 0.0  ;;  %v1479_v14 = vmul.f32 %v3003_v52, %v1228_v33  ;;  %v1481_v15 = vmul.f32 %v3005_v62, %v1389_v30  ;;  %1969 = vmatmul.mubr.f32.gmra.mxu1 %v1622_v28 }
 0x28e   : > { %v1564_v37 = vadd.f32 %v3007_v25, %v1478_v4  ;;  %v1232_v19 = vpop.f32.mrf.mxu0  ;;  %v1393_v38 = vpop.f32.mrf.mxu1  ;;  %v1566_v39 = vadd.f32 %v3009_v57, %v1480_v32 }
 0x28f   : > { %v1565_v40 = vadd.f32 %v3013_v60, %v1479_v14  ;;  %v1567_v41 = vadd.f32 %v3015_v61, %v1481_v15  ;;  %v1482_v42 = vmul.f32 %v2999_v45, %v1232_v19  ;;  %1828 = vmatprep.mubr.f32.mxu0 %v1625_v5  ;;  %v1484_v24 = vmul.f32 %v3001_v46, %v1393_v38 }
 0x290   : > { %1973 = vmatprep.mubr.f32.mxu1 %v1627_v31  ;;  %v1234_v63 = vpop.f32.mrf.mxu0  ;;  %v1395_v56 = vpop.f32.mrf.mxu1  ;;  %1829 = vmatmul.mubr.f32.gmra.mxu0 %v1624_v36  ;;  %v1628_v48 = vmax.f32 %v1564_v37, 0.0  ;;  %v1630_v49 = vmax.f32 %v1566_v39, 0.0 }
 0x291   : > { %v1629_v34 = vmax.f32 %v1565_v40, 0.0  ;;  %v1631_v35 = vmax.f32 %v1567_v41, 0.0  ;;  %v1483_v0 = vmul.f32 %v3003_v52, %v1234_v63  ;;  %v1485_v1 = vmul.f32 %v3005_v62, %v1395_v56  ;;  %1974 = vmatmul.mubr.f32.gmra.mxu1 %v1626_v43 }
 0x292   : > { %v1238_v53 = vpop.f32.mrf.mxu0  ;;  %v1399_v3 = vpop.f32.mrf.mxu1  ;;  %v1568_v50 = vadd.f32 %v3007_v25, %v1482_v42  ;;  %v1570_v44 = vadd.f32 %v3009_v57, %v1484_v24 }
 0x293   : > { %v1486_v6 = vmul.f32 %v2999_v45, %v1238_v53  ;;  %1833 = vmatprep.mubr.f32.mxu0 %v1629_v34  ;;  %1978 = vmatprep.mubr.f32.mxu1 %v1631_v35  ;;  %v1569_v7 = vadd.f32 %v3013_v60, %v1483_v0  ;;  %v1571_v51 = vadd.f32 %v3015_v61, %v1485_v1 }
 0x294   : > { %v1488_v2 = vmul.f32 %v3001_v46, %v1399_v3  ;;  %v1240_v47 = vpop.f32.mrf.mxu0  ;;  %v1401_v8 = vpop.f32.mrf.mxu1  ;;  %1834 = vmatmul.mubr.f32.gmra.mxu0 %v1628_v48  ;;  %v1632_v45 = vmax.f32 %v1568_v50, 0.0  ;;  %v1634_v58 = vmax.f32 %v1570_v44, 0.0 }
 0x295   : > { %v1487_v9 = vmul.f32 %v3003_v52, %v1240_v47  ;;  %v1489_v12 = vmul.f32 %v3005_v62, %v1401_v8  ;;  %v1633_v13 = vmax.f32 %v1569_v7, 0.0  ;;  %v1635_v54 = vmax.f32 %v1571_v51, 0.0  ;;  %1979 = vmatmul.mubr.f32.gmra.mxu1 %v1630_v49 }
 0x296   : > { %v1572_v55 = vadd.f32 %v3007_v25, %v1486_v6  ;;  %v1574_v46 = vadd.f32 %v3009_v57, %v1488_v2 }
 0x297   : > { %v1573_v16 = vadd.f32 %v3013_v60, %v1487_v9  ;;  %v1575_v17 = vadd.f32 %v3015_v61, %v1489_v12  ;;  %1838 = vmatprep.mubr.f32.mxu0 %v1633_v13  ;;  %1983 = vmatprep.mubr.f32.mxu1 %v1635_v54 }
 0x298   : > { %1839 = vmatmul.mubr.f32.gmra.mxu0 %v1632_v45  ;;  %v1636_v62 = vmax.f32 %v1572_v55, 0.0  ;;  %v1638_v59 = vmax.f32 %v1574_v46, 0.0 }
 0x299   : > { %v1637_v10 = vmax.f32 %v1573_v16, 0.0  ;;  %v1639_v52 = vmax.f32 %v1575_v17, 0.0  ;;  %1984 = vmatmul.mubr.f32.gmra.mxu1 %v1634_v58 }
 0x29b   : > { %1843 = vmatprep.mubr.f32.mxu0 %v1637_v10  ;;  %1988 = vmatprep.mubr.f32.mxu1 %v1639_v52 }
 0x29c   : > { %1844 = vmatmul.mubr.f32.gmra.mxu0 %v1636_v62 }
 0x29d   : > { %1989 = vmatmul.mubr.f32.gmra.mxu1 %v1638_v59 }
 0x320   : > { %v2226_v25 = vpop.f32.mrf.mxu0 }
 0x321   : > { %v2306_v60 = vpop.f32.mrf.mxu1 }
 0x322   : > { %v2227_v11 = vpop.f32.mrf.mxu0 }
 0x323   : > { %v2228_v61 = vadd.f32 %v2227_v11, %v2226_v25  ;;  %v2307_v20 = vpop.f32.mrf.mxu1 }
 0x324   : > { %v2308_v57 = vadd.f32 %v2307_v20, %v2306_v60  ;;  %v2229_v21 = vpop.f32.mrf.mxu0 }
 0x325   : > { %v2309_v18 = vpop.f32.mrf.mxu1 }
 0x326   : > { %v1916_v22 = vadd.f32 %v2308_v57, %v2228_v61  ;;  %v2230_v23 = vpop.f32.mrf.mxu0 }
 0x327   : > { %v2231_v26 = vadd.f32 %v2230_v23, %v2229_v21  ;;  %v2310_v27 = vpop.f32.mrf.mxu1 }
 0x328   : > { %1994 = vst [vmem:[%s2711_s17] sm:$0xff] %v1916_v22  ;;  %v2311_v28 = vadd.f32 %v2310_v27, %v2309_v18  ;;  %v2232_v29 = vpop.f32.mrf.mxu0 }
 0x329   : > { %v2312_v4 = vpop.f32.mrf.mxu1 }
 0x32a   : > { %v1921_v32 = vadd.f32 %v2311_v28, %v2231_v26  ;;  %v2233_v33 = vpop.f32.mrf.mxu0 }
 0x32b   : > { %v2313_v30 = vpop.f32.mrf.mxu1  ;;  %v2234_v5 = vadd.f32 %v2233_v33, %v2232_v29 }
 0x32c   : > { %1995 = vst [vmem:[%s2711_s17 + $0x8] sm:$0xff] %v1921_v32  ;;  %v2314_v31 = vadd.f32 %v2313_v30, %v2312_v4  ;;  %v2235_v14 = vpop.f32.mrf.mxu0 }
 0x32d   : > { %v2315_v15 = vpop.f32.mrf.mxu1 }
 0x32e   : > { %v1926_v36 = vadd.f32 %v2314_v31, %v2234_v5  ;;  %v2236_v37 = vpop.f32.mrf.mxu0 }
 0x32f   : > { %v2316_v19 = vpop.f32.mrf.mxu1  ;;  %v2237_v38 = vadd.f32 %v2236_v37, %v2235_v14 }
 0x330   : > { %1996 = vst [vmem:[%s2711_s17 + $0x10] sm:$0xff] %v1926_v36  ;;  %v2317_v39 = vadd.f32 %v2316_v19, %v2315_v15  ;;  %v2238_v40 = vpop.f32.mrf.mxu0 }
 0x331   : > { %v2318_v42 = vpop.f32.mrf.mxu1 }
 0x332   : > { %v1931_v41 = vadd.f32 %v2317_v39, %v2237_v38  ;;  %v2239_v43 = vpop.f32.mrf.mxu0 }
 0x333   : > { %v2240_v24 = vadd.f32 %v2239_v43, %v2238_v40  ;;  %v2319_v63 = vpop.f32.mrf.mxu1 }
 0x334   : > { %1997 = vst [vmem:[%s2711_s17 + $0x18] sm:$0xff] %v1931_v41  ;;  %v2320_v56 = vadd.f32 %v2319_v63, %v2318_v42  ;;  %v2241_v34 = vpop.f32.mrf.mxu0 }
 0x335   : > { %v2321_v35 = vpop.f32.mrf.mxu1 }
 0x336   : > { %v1936_v0 = vadd.f32 %v2320_v56, %v2240_v24  ;;  %v2242_v1 = vpop.f32.mrf.mxu0 }
 0x337   : > { %v2243_v53 = vadd.f32 %v2242_v1, %v2241_v34  ;;  %v2322_v3 = vpop.f32.mrf.mxu1 }
 0x338   : > { %1998 = vst [vmem:[%s2711_s17 + $0x20] sm:$0xff] %v1936_v0  ;;  %v2323_v48 = vadd.f32 %v2322_v3, %v2321_v35  ;;  %v2244_v49 = vpop.f32.mrf.mxu0 }
 0x339   : > { %v2324_v50 = vpop.f32.mrf.mxu1 }
 0x33a   : > { %v1941_v6 = vadd.f32 %v2323_v48, %v2243_v53  ;;  %v2245_v44 = vpop.f32.mrf.mxu0 }
 0x33b   : > { %v2246_v7 = vadd.f32 %v2245_v44, %v2244_v49  ;;  %v2325_v51 = vpop.f32.mrf.mxu1 }
 0x33c   : > { %1999 = vst [vmem:[%s2711_s17 + $0x28] sm:$0xff] %v1941_v6  ;;  %v2326_v2 = vadd.f32 %v2325_v51, %v2324_v50  ;;  %v2247_v47 = vpop.f32.mrf.mxu0 }
 0x33d   : > { %v2327_v8 = vpop.f32.mrf.mxu1 }
 0x33e   : > { %v1946_v9 = vadd.f32 %v2326_v2, %v2246_v7  ;;  %v2248_v12 = vpop.f32.mrf.mxu0 }
 0x33f   : > { %v2249_v13 = vadd.f32 %v2248_v12, %v2247_v47  ;;  %v2328_v54 = vpop.f32.mrf.mxu1 }
 0x340   : > { %2000 = vst [vmem:[%s2711_s17 + $0x30] sm:$0xff] %v1946_v9  ;;  %v2329_v45 = vadd.f32 %v2328_v54, %v2327_v8  ;;  %v2250_v55 = vpop.f32.mrf.mxu0 }
 0x341   : > { %v2330_v16 = vpop.f32.mrf.mxu1 }
 0x342   : > { %v1951_v17 = vadd.f32 %v2329_v45, %v2249_v13  ;;  %v2251_v58 = vpop.f32.mrf.mxu0 }
 0x343   : > { %v2252_v46 = vadd.f32 %v2251_v58, %v2250_v55  ;;  %v2331_v10 = vpop.f32.mrf.mxu1 }
 0x344   : > { %2001 = vst [vmem:[%s2711_s17 + $0x38] sm:$0xff] %v1951_v17  ;;  %v2332_v52 = vadd.f32 %v2331_v10, %v2330_v16  ;;  %v2253_v62 = vpop.f32.mrf.mxu0 }
 0x345   : > { %v2333_v59 = vpop.f32.mrf.mxu1 }
 0x346   : > { %v1956_v25 = vadd.f32 %v2332_v52, %v2252_v46  ;;  %v2254_v60 = vpop.f32.mrf.mxu0 }
 0x347   : > { %v2255_v11 = vadd.f32 %v2254_v60, %v2253_v62  ;;  %v2334_v61 = vpop.f32.mrf.mxu1 }
 0x348   : > { %2002 = vst [vmem:[%s2711_s17 + $0x40] sm:$0xff] %v1956_v25  ;;  %v2335_v20 = vadd.f32 %v2334_v61, %v2333_v59  ;;  %v2256_v57 = vpop.f32.mrf.mxu0 }
 0x349   : > { %v2336_v21 = vpop.f32.mrf.mxu1 }
 0x34a   : > { %v1961_v18 = vadd.f32 %v2335_v20, %v2255_v11  ;;  %v2257_v22 = vpop.f32.mrf.mxu0 }
 0x34b   : > { %v2258_v23 = vadd.f32 %v2257_v22, %v2256_v57  ;;  %v2337_v26 = vpop.f32.mrf.mxu1 }
 0x34c   : > { %2003 = vst [vmem:[%s2711_s17 + $0x48] sm:$0xff] %v1961_v18  ;;  %v2338_v27 = vadd.f32 %v2337_v26, %v2336_v21  ;;  %v2259_v28 = vpop.f32.mrf.mxu0 }
 0x34d   : > { %v2339_v29 = vpop.f32.mrf.mxu1 }
 0x34e   : > { %v1966_v4 = vadd.f32 %v2338_v27, %v2258_v23  ;;  %v2260_v32 = vpop.f32.mrf.mxu0 }
 0x34f   : > { %v2261_v33 = vadd.f32 %v2260_v32, %v2259_v28  ;;  %v2340_v30 = vpop.f32.mrf.mxu1 }
 0x350   : > { %2004 = vst [vmem:[%s2711_s17 + $0x50] sm:$0xff] %v1966_v4  ;;  %v2341_v5 = vadd.f32 %v2340_v30, %v2339_v29  ;;  %v2262_v31 = vpop.f32.mrf.mxu0 }
 0x351   : > { %v2342_v14 = vpop.f32.mrf.mxu1 }
 0x352   : > { %v1971_v15 = vadd.f32 %v2341_v5, %v2261_v33  ;;  %v2263_v36 = vpop.f32.mrf.mxu0 }
 0x353   : > { %v2264_v37 = vadd.f32 %v2263_v36, %v2262_v31  ;;  %v2343_v19 = vpop.f32.mrf.mxu1 }
 0x354   : > { %2005 = vst [vmem:[%s2711_s17 + $0x58] sm:$0xff] %v1971_v15  ;;  %v2344_v38 = vadd.f32 %v2343_v19, %v2342_v14  ;;  %v2265_v39 = vpop.f32.mrf.mxu0 }
 0x355   : > { %v2345_v40 = vpop.f32.mrf.mxu1 }
 0x356   : > { %v1976_v41 = vadd.f32 %v2344_v38, %v2264_v37  ;;  %v2266_v42 = vpop.f32.mrf.mxu0 }
 0x357   : > { %v2267_v43 = vadd.f32 %v2266_v42, %v2265_v39  ;;  %v2346_v24 = vpop.f32.mrf.mxu1 }
 0x358   : > { %2006 = vst [vmem:[%s2711_s17 + $0x60] sm:$0xff] %v1976_v41  ;;  %v2347_v63 = vadd.f32 %v2346_v24, %v2345_v40  ;;  %v2268_v56 = vpop.f32.mrf.mxu0 }
 0x359   : > { %v2348_v34 = vpop.f32.mrf.mxu1 }
 0x35a   : > { %v1981_v35 = vadd.f32 %v2347_v63, %v2267_v43  ;;  %v2269_v0 = vpop.f32.mrf.mxu0 }
 0x35b   : > { %v2270_v1 = vadd.f32 %v2269_v0, %v2268_v56  ;;  %v2349_v53 = vpop.f32.mrf.mxu1 }
 0x35c   : > { %2007 = vst [vmem:[%s2711_s17 + $0x68] sm:$0xff] %v1981_v35  ;;  %v2350_v3 = vadd.f32 %v2349_v53, %v2348_v34  ;;  %v2271_v48 = vpop.f32.mrf.mxu0 }
 0x35d   : > { %v2351_v49 = vpop.f32.mrf.mxu1 }
 0x35e   : > { %v1986_v50 = vadd.f32 %v2350_v3, %v2270_v1  ;;  %v2272_v6 = vpop.f32.mrf.mxu0 }
 0x35f   : > { %v2273_v44 = vadd.f32 %v2272_v6, %v2271_v48  ;;  %v2352_v7 = vpop.f32.mrf.mxu1 }
 0x360   : > { %2008 = vst [vmem:[%s2711_s17 + $0x70] sm:$0xff] %v1986_v50  ;;  %v2353_v51 = vadd.f32 %v2352_v7, %v2351_v49 }
 0x362   : > { %v1991_v2 = vadd.f32 %v2353_v51, %v2273_v44 }
 0x364   : > { %2009 = vst [vmem:[%s2711_s17 + $0x78] sm:$0xff] %v1991_v2 }
 0x365 PF: > { %s2018_s10 = smul.u32 %s2552_s21, %s2556_s22  ;;  %s2025_s6 = sshll.u32 %s2711_s17, 4  ;;  %s3162_s6 = int_to_ptr.vmem [resolvable:$true] %s2025_s6 }
 0x366   : > { %s3233_s30 = sand.u32 1, %s2544_s19   ;;  %s2472_s12 = scalar_lea.vmem %s3162_s6, 2048 }
 0x367   : > { %s2193_s16 = sshll.u32 %s2018_s10, 11  ;;  %s3171_s9 = scalar_lea.sflag [#allocation8], %s3233_s30 }
 0x368   : > { %s3167_s27 = scalar_lea.hbm %s3227_s5, %s2193_s16  ;;  %p2473_p0 = scmp.ne.s32.totalorder %s3162_s6, %s2472_s12 }
 0x369   : > { %s2577_s21 = smov [#allocation9]  }
 0x36a   : > { %p2474_p1 = pnand %p2473_p0, %p2664_p6  ;;  %s2476_s22 = sshll.u32 %s2577_s21, 4  ;;  %s2477_s22 = int_to_ptr.vmem [resolvable:$false] %s2476_s22 }
 0x36b   : > { %s2478_s17 = scalar_lea.vmem %s2477_s22, 4096  ;;  %p2479_p3 = scmp.lt.s32.totalorder %s3162_s6, %s2477_s22 }
 0x36c   : > { %p2475_p2 = pneg %p2474_p1  ;;  %p2480_p4 = scmp.lt.s32.totalorder %s2478_s17, %s2472_s12 }
 0x36e   : > { %p2481_p5 = por %p2480_p4, %p2479_p3 }
 0x370   : > { %p2482_p7 = pnand %p2481_p5, %p2475_p2 }
 0x372   : > { %2485 = shalt.err (!%p2482_p7)
}
 0x373   : > { %s2486_s13 = scalar_lea.hbm %s3167_s27, 2048  ;;  %s2490_s16 = scalar_lea.hbm %s3227_s5, 4096 }
 0x374   : > { %p2487_p9 = scmp.ne.s32.totalorder %s3167_s27, %s2486_s13  ;;  %p2491_p11 = scmp.lt.s32.totalorder %s3167_s27, %s3227_s5 }
 0x375   : > { %p2492_p12 = scmp.lt.s32.totalorder %s2490_s16, %s2486_s13 }
 0x376   : > { %p2488_p8 = pnand %p2487_p9, %p2664_p6 }
 0x377   : > { %p2493_p13 = por %p2492_p12, %p2491_p11 }
 0x378   : > { %p2489_p10 = pneg %p2488_p8 }
 0x37a   : > { %p2494_p0 = pnand %p2493_p13, %p2489_p10 }
 0x37c   : > { %2497 = shalt.err (!%p2494_p0)
}
 0x37d   : > { %s2578_s30 = smov 128   ;;  %s2579_s12 = smov 8  }
 0x37e   : > { %2358 = dma.vmem_to_hbm [thread:$0]  (%p2664_p6), %s3162_s6, 2048, %s3167_s27, %s3171_s9, %s2578_s30, %s2578_s30, %s2579_s12  }
 0x37f PF: > { %p2370_p1 = scmp.ge.s32.totalorder %s2568_s25, 2  ;;  %s2040_s21 = sand.u32 1, %s2540_s18  }
 0x380   : > { %p3234_p2 = scmp.ne.s32.totalorder %s3230_s8, 0  ;;  %s2041_s22 = scalar_lea.sflag [#allocation8], %s2040_s21 }
 0x382   : > { %p2365_p3 = pnand %p2370_p1, %p3234_p2 }
 0x384   : > { %p2366_p4 = pneg %p2365_p3 }
 0x386   : > { %2535 = dma.done.wait (%p2366_p4), %s2041_s22, 2048  }
 0x387   : > { %2537 = vsyncadd (%p2366_p4), %s2041_s22, 4294965248  ;;  %s19_s25 = sadd.s32 1, %s2568_s25   ;;  %s3235_s18 = smov %s2544_s19 }
 0x388   : > { %p16_p5 = scmp.ge.s32.totalorder %s19_s25, 6   ;;  %s3236_s19 = smov %s2548_s20 }
 0x389   : > { %s3237_s20 = smov %s2689_s15  ;;  %s3238_s21 = smov %s2560_s23 }
 0x38a   : > { %s3239_s22 = smov %s2564_s24  ;;  %s3240_s23 = smov %s3243_s28 }
 0x38b   : > { %s3241_s24 = smov %s3247_s29  ;;  %18 = sbr.rel (!%p16_p5) target bundleno = 6 (0x6), region = 96 }
 0x390   :  { %2046 = vsyncpa [#allocation7], 1 }
 0x391   :  { %2048 = vsyncpa [#allocation7 + $0x1], 1 }
 0x392   :  { %2049 = vsyncpa [#allocation8], 1 }
 0x393   :  { %2051 = vsyncpa [#allocation8 + $0x1], 1 }

</bundles_post_ra>
